<compile_context>
chip_gen: v7x
topology: tpu7x:2x2x1
jax: 0.10.0
libtpu: 0.0.40
codegen_flags: <defaults>
</compile_context>

<pallas_src>
import functools

import jax
import jax.numpy as jnp
from jax.experimental import pallas as pl
from jax.experimental.pallas import tpu as pltpu


def _attention_kernel(x_ref, wqkv_ref, wout_ref, bout_ref, o_ref,
                      *, batches_per_step, seq_len, heads, head_dim, scale):
    bt, n = batches_per_step, seq_len
    inner = heads * head_dim
    rows = bt * n

    # ---- QKV projection: one lane-dense MXU matmul over the whole row tile --
    x = x_ref[...]                                             # (rows, dim)
    qkv = jnp.dot(x, wqkv_ref[...],
                  preferred_element_type=jnp.float32)          # (rows, 3*inner)

    # Contiguous 128-lane-aligned slabs.  Softmax scale folded into q here
    # (rows*inner multiplies) instead of scaling the (N, N) score matrices.
    q = qkv[:, :inner] * scale
    k = qkv[:, inner:2 * inner]
    v = qkv[:, 2 * inner:]

    # ---- per-head scaled dot-product attention (loop unrolled at trace time).
    # Each head contracts with a batched 'bqd,bkd->bqk' einsum over the bt
    # batches in this tile, keeping attention block-diagonal across batches and
    # avoiding any explicit k transpose.
    ctx_heads = []
    for h in range(heads):
        lo = h * head_dim
        hi = lo + head_dim
        qh = q[:, lo:hi].reshape(bt, n, head_dim)              # (bt, n, hd)
        kh = k[:, lo:hi].reshape(bt, n, head_dim)
        vh = v[:, lo:hi].reshape(bt, n, head_dim)

        s = jnp.einsum('bqd,bkd->bqk', qh, kh,
                       preferred_element_type=jnp.float32)     # (bt, n, n)
        s = s - jnp.max(s, axis=-1, keepdims=True)
        p = jnp.exp(s)
        denom = jnp.sum(p, axis=-1, keepdims=True)
        # Reciprocal-multiply instead of divide.  (approx=True would move this
        # onto the EUP slot; kept exact here to hold the 1e-5 check below.)
        p = p * pl.reciprocal(denom)

        ctx = jnp.einsum('bqk,bkd->bqd', p, vh,
                         preferred_element_type=jnp.float32)   # (bt, n, hd)
        ctx_heads.append(ctx.reshape(rows, head_dim))

    # Head-interleave back to (rows, inner) so the output projection is a
    # single K=inner lane-dense MXU matmul.
    attn_out = jnp.concatenate(ctx_heads, axis=-1)             # (rows, inner)

    # ---- output projection + bias ----
    y = jnp.dot(attn_out, wout_ref[...],
                preferred_element_type=jnp.float32)            # (rows, dim)
    y = y + bout_ref[...]                                      # (1, dim) bcast
    # NOTE: with the module default dim=32 (< 128 lanes) this store is
    # inherently lane-sparse; for dim >= 128 it is a dense slab store.
    o_ref[...] = y.astype(o_ref.dtype)


def attention_pallas(x, w_qkv, w_out, b_out, *, heads, head_dim,
                     row_target=256):
    """Fused attention forward.  Weights are stored pre-transposed so the
    kernel computes x @ W (PyTorch nn.Linear stores (out, in))."""
    b, n, dim = x.shape
    inner = heads * head_dim
    scale = head_dim ** -0.5

    # Batches per grid step: aim for ~row_target rows per MXU tile while
    # dividing the batch evenly (tiny problems collapse to a single step).
    bt = max(1, min(b, row_target // max(n, 1)))
    while b % bt:
        bt -= 1
    rows_tile = bt * n
    grid = (b // bt,)

    kernel = functools.partial(
        _attention_kernel,
        batches_per_step=bt, seq_len=n,
        heads=heads, head_dim=head_dim, scale=scale)

    x2d = x.reshape(b * n, dim)

    out2d = pl.pallas_call(
        kernel,
        out_shape=jax.ShapeDtypeStruct((b * n, dim), x.dtype),
        grid_spec=pltpu.PrefetchScalarGridSpec(
            num_scalar_prefetch=0,
            grid=grid,
            in_specs=[
                pl.BlockSpec((rows_tile, dim), lambda i: (i, 0)),     # x rows
                pl.BlockSpec((dim, 3 * inner), lambda i: (0, 0)),     # W_qkv
                pl.BlockSpec((inner, dim), lambda i: (0, 0)),         # W_out
                pl.BlockSpec((1, dim), lambda i: (0, 0)),             # b_out
            ],
            out_specs=pl.BlockSpec((rows_tile, dim), lambda i: (i, 0)),
        ),
        compiler_params=pltpu.CompilerParams(
            dimension_semantics=("parallel",)),
    )(x2d, w_qkv, w_out, b_out)

    return out2d.reshape(b, n, dim)


def attention_reference(x, w_qkv, w_out, b_out, *, heads, head_dim):
    """Pure-JAX reference matching the PyTorch forward (mask/rel-pos = None)."""
    b, n, dim = x.shape
    inner = heads * head_dim
    scale = head_dim ** -0.5
    qkv = jnp.einsum("bnd,de->bne", x, w_qkv)
    qkv = qkv.reshape(b, n, 3, heads, head_dim).transpose(2, 0, 3, 1, 4)
    q, k, v = qkv[0], qkv[1], qkv[2]                          # (b, h, n, hd)
    dots = jnp.einsum("bhqd,bhkd->bhqk", q, k) * scale
    attn = jax.nn.softmax(dots, axis=-1)
    out = jnp.einsum("bhqk,bhkd->bhqd", attn, v)
    out = out.transpose(0, 2, 1, 3).reshape(b, n, inner)
    return jnp.einsum("bni,id->bnd", out, w_out) + b_out[0]


if __name__ == "__main__":
    # Small shapes consistent with the module defaults:
    #   dim=32, heads=8, head_dim=16 -> inner_dim=128, project_out=True
    B, N, DIM = 2, 8, 32
    HEADS, HEAD_DIM = 8, 16
    INNER = HEADS * HEAD_DIM

    key = jax.random.PRNGKey(0)
    kx, kqkv, kw, kb = jax.random.split(key, 4)

    x = jax.random.normal(kx, (B, N, DIM), dtype=jnp.float32)

    # Deterministic parameter init (Linear weights stored pre-transposed so the
    # kernel computes x @ W; PyTorch stores (out, in)).
    w_qkv = jax.random.uniform(kqkv, (DIM, 3 * INNER), dtype=jnp.float32,
                               minval=-DIM ** -0.5, maxval=DIM ** -0.5)
    w_out = jax.random.uniform(kw, (INNER, DIM), dtype=jnp.float32,
                               minval=-INNER ** -0.5, maxval=INNER ** -0.5)
    b_out = jax.random.uniform(kb, (1, DIM), dtype=jnp.float32,
                               minval=-INNER ** -0.5, maxval=INNER ** -0.5)

    out = attention_pallas(x, w_qkv, w_out, b_out,
                           heads=HEADS, head_dim=HEAD_DIM)
    out = jax.block_until_ready(out)

    ref = attention_reference(x, w_qkv, w_out, b_out,
                              heads=HEADS, head_dim=HEAD_DIM)
    assert out.shape == (B, N, DIM)
    assert jnp.allclose(out, ref, atol=1e-5, rtol=1e-5), "mismatch vs reference"

    # TODO(synk): attn_mask / relative_pos_embed (bias & rotary) / dropout
    # paths not implemented; forward corresponds to both set to None (eval).
    print("KERNEL_OK")
</pallas_src>

<mosaic_0001>
module attributes {stable_mosaic.version = 11 : i64} {
  func.func @_attention_kernel(%arg0: i32, %arg1: memref<16x32xf32, #tpu.memory_space<vmem>>, %arg2: memref<32x384xf32, #tpu.memory_space<vmem>>, %arg3: memref<128x32xf32, #tpu.memory_space<vmem>>, %arg4: memref<1x32xf32, #tpu.memory_space<vmem>>, %arg5: memref<16x32xf32, #tpu.memory_space<vmem>>) attributes {dimension_semantics = [#tpu.dimension_semantics<parallel>], iteration_bounds = array<i64: 1>, scalar_prefetch = 0 : i64, scratch_operands = 0 : i64, tpu.core_type = #tpu.core_type<tc>, window_params = [{transform_indices = @transform_0, window_bounds = array<i64: 16, 32>}, {pipeline_mode = #tpu.pipeline_mode<synchronous>, transform_indices = @transform_1, window_bounds = array<i64: 32, 384>}, {pipeline_mode = #tpu.pipeline_mode<synchronous>, transform_indices = @transform_2, window_bounds = array<i64: 128, 32>}, {pipeline_mode = #tpu.pipeline_mode<synchronous>, transform_indices = @transform_3, window_bounds = array<i64: 1, 32>}, {transform_indices = @transform_4, window_bounds = array<i64: 16, 32>}]} {
    %c0 = arith.constant 0 : index
    %c0_0 = arith.constant 0 : index
    %0 = vector.load %arg1[%c0, %c0_0] : memref<16x32xf32, #tpu.memory_space<vmem>>, vector<16x32xf32>
    %c0_1 = arith.constant 0 : index
    %c0_2 = arith.constant 0 : index
    %1 = vector.load %arg2[%c0_1, %c0_2] : memref<32x384xf32, #tpu.memory_space<vmem>>, vector<32x384xf32>
    %cst = arith.constant dense<0.000000e+00> : vector<16x384xf32>
    %2 = tpu.matmul %0, %1, %cst {dimension_numbers = #tpu.dot_dimension_numbers<[1], [0], [0], [1], [0, 0, 1, 1], [], []>} : vector<16x32xf32>, vector<32x384xf32>, vector<16x384xf32> -> vector<16x384xf32>
    %3 = vector.extract_strided_slice %2 {offsets = [0, 0], sizes = [16, 128], strides = [1, 1]} : vector<16x384xf32> to vector<16x128xf32>
    %cst_3 = arith.constant 2.500000e-01 : f32
    %4 = vector.broadcast %cst_3 : f32 to vector<16x128xf32>
    %5 = arith.mulf %3, %4 : vector<16x128xf32>
    %6 = vector.extract_strided_slice %2 {offsets = [0, 128], sizes = [16, 128], strides = [1, 1]} : vector<16x384xf32> to vector<16x128xf32>
    %7 = vector.extract_strided_slice %2 {offsets = [0, 256], sizes = [16, 128], strides = [1, 1]} : vector<16x384xf32> to vector<16x128xf32>
    %8 = vector.extract_strided_slice %5 {offsets = [0, 0], sizes = [16, 16], strides = [1, 1]} : vector<16x128xf32> to vector<16x16xf32>
    %9 = vector.shape_cast %8 : vector<16x16xf32> to vector<2x8x16xf32>
    %10 = vector.extract_strided_slice %6 {offsets = [0, 0], sizes = [16, 16], strides = [1, 1]} : vector<16x128xf32> to vector<16x16xf32>
    %11 = vector.shape_cast %10 : vector<16x16xf32> to vector<2x8x16xf32>
    %12 = vector.extract_strided_slice %7 {offsets = [0, 0], sizes = [16, 16], strides = [1, 1]} : vector<16x128xf32> to vector<16x16xf32>
    %13 = vector.shape_cast %12 : vector<16x16xf32> to vector<2x8x16xf32>
    "tpu.trace_start"() <{level = 10 : i32, message = "bqd,bkd->bqk"}> : () -> ()
    %cst_4 = arith.constant dense<0.000000e+00> : vector<2x8x8xf32>
    %14 = tpu.matmul %9, %11, %cst_4 {dimension_numbers = #tpu.dot_dimension_numbers<[2], [2], [1], [1], [0, 0, 0, 1, 1, 1], [0], [0]>} : vector<2x8x16xf32>, vector<2x8x16xf32>, vector<2x8x8xf32> -> vector<2x8x8xf32>
    "tpu.trace_stop"() : () -> ()
    %cst_5 = arith.constant dense<0xFF800000> : vector<2x8xf32>
    %15 = vector.multi_reduction <maximumf>, %14, %cst_5 [2] : vector<2x8x8xf32> to vector<2x8xf32>
    %16 = vector.shape_cast %15 : vector<2x8xf32> to vector<2x8x1xf32>
    %17 = vector.broadcast %16 : vector<2x8x1xf32> to vector<2x8x8xf32>
    %18 = arith.subf %14, %17 : vector<2x8x8xf32>
    %19 = math.exp %18 : vector<2x8x8xf32>
    %cst_6 = arith.constant dense<0.000000e+00> : vector<2x8xf32>
    %20 = vector.multi_reduction <add>, %19, %cst_6 [2] : vector<2x8x8xf32> to vector<2x8xf32>
    %21 = vector.shape_cast %20 : vector<2x8xf32> to vector<2x8x1xf32>
    %22 = tpu.reciprocal %21 : vector<2x8x1xf32> -> vector<2x8x1xf32>
    %23 = vector.broadcast %22 : vector<2x8x1xf32> to vector<2x8x8xf32>
    %24 = arith.mulf %19, %23 : vector<2x8x8xf32>
    "tpu.trace_start"() <{level = 10 : i32, message = "bqk,bkd->bqd"}> : () -> ()
    %cst_7 = arith.constant dense<0.000000e+00> : vector<2x8x16xf32>
    %25 = tpu.matmul %24, %13, %cst_7 {dimension_numbers = #tpu.dot_dimension_numbers<[2], [1], [1], [2], [0, 0, 0, 1, 1, 2], [0], [0]>} : vector<2x8x8xf32>, vector<2x8x16xf32>, vector<2x8x16xf32> -> vector<2x8x16xf32>
    "tpu.trace_stop"() : () -> ()
    %26 = vector.shape_cast %25 : vector<2x8x16xf32> to vector<16x16xf32>
    %27 = vector.extract_strided_slice %5 {offsets = [0, 16], sizes = [16, 16], strides = [1, 1]} : vector<16x128xf32> to vector<16x16xf32>
    %28 = vector.shape_cast %27 : vector<16x16xf32> to vector<2x8x16xf32>
    %29 = vector.extract_strided_slice %6 {offsets = [0, 16], sizes = [16, 16], strides = [1, 1]} : vector<16x128xf32> to vector<16x16xf32>
    %30 = vector.shape_cast %29 : vector<16x16xf32> to vector<2x8x16xf32>
    %31 = vector.extract_strided_slice %7 {offsets = [0, 16], sizes = [16, 16], strides = [1, 1]} : vector<16x128xf32> to vector<16x16xf32>
    %32 = vector.shape_cast %31 : vector<16x16xf32> to vector<2x8x16xf32>
    "tpu.trace_start"() <{level = 10 : i32, message = "bqd,bkd->bqk"}> : () -> ()
    %cst_8 = arith.constant dense<0.000000e+00> : vector<2x8x8xf32>
    %33 = tpu.matmul %28, %30, %cst_8 {dimension_numbers = #tpu.dot_dimension_numbers<[2], [2], [1], [1], [0, 0, 0, 1, 1, 1], [0], [0]>} : vector<2x8x16xf32>, vector<2x8x16xf32>, vector<2x8x8xf32> -> vector<2x8x8xf32>
    "tpu.trace_stop"() : () -> ()
    %cst_9 = arith.constant dense<0xFF800000> : vector<2x8xf32>
    %34 = vector.multi_reduction <maximumf>, %33, %cst_9 [2] : vector<2x8x8xf32> to vector<2x8xf32>
    %35 = vector.shape_cast %34 : vector<2x8xf32> to vector<2x8x1xf32>
    %36 = vector.broadcast %35 : vector<2x8x1xf32> to vector<2x8x8xf32>
    %37 = arith.subf %33, %36 : vector<2x8x8xf32>
    %38 = math.exp %37 : vector<2x8x8xf32>
    %cst_10 = arith.constant dense<0.000000e+00> : vector<2x8xf32>
    %39 = vector.multi_reduction <add>, %38, %cst_10 [2] : vector<2x8x8xf32> to vector<2x8xf32>
    %40 = vector.shape_cast %39 : vector<2x8xf32> to vector<2x8x1xf32>
    %41 = tpu.reciprocal %40 : vector<2x8x1xf32> -> vector<2x8x1xf32>
    %42 = vector.broadcast %41 : vector<2x8x1xf32> to vector<2x8x8xf32>
    %43 = arith.mulf %38, %42 : vector<2x8x8xf32>
    "tpu.trace_start"() <{level = 10 : i32, message = "bqk,bkd->bqd"}> : () -> ()
    %cst_11 = arith.constant dense<0.000000e+00> : vector<2x8x16xf32>
    %44 = tpu.matmul %43, %32, %cst_11 {dimension_numbers = #tpu.dot_dimension_numbers<[2], [1], [1], [2], [0, 0, 0, 1, 1, 2], [0], [0]>} : vector<2x8x8xf32>, vector<2x8x16xf32>, vector<2x8x16xf32> -> vector<2x8x16xf32>
    "tpu.trace_stop"() : () -> ()
    %45 = vector.shape_cast %44 : vector<2x8x16xf32> to vector<16x16xf32>
    %46 = vector.extract_strided_slice %5 {offsets = [0, 32], sizes = [16, 16], strides = [1, 1]} : vector<16x128xf32> to vector<16x16xf32>
    %47 = vector.shape_cast %46 : vector<16x16xf32> to vector<2x8x16xf32>
    %48 = vector.extract_strided_slice %6 {offsets = [0, 32], sizes = [16, 16], strides = [1, 1]} : vector<16x128xf32> to vector<16x16xf32>
    %49 = vector.shape_cast %48 : vector<16x16xf32> to vector<2x8x16xf32>
    %50 = vector.extract_strided_slice %7 {offsets = [0, 32], sizes = [16, 16], strides = [1, 1]} : vector<16x128xf32> to vector<16x16xf32>
    %51 = vector.shape_cast %50 : vector<16x16xf32> to vector<2x8x16xf32>
    "tpu.trace_start"() <{level = 10 : i32, message = "bqd,bkd->bqk"}> : () -> ()
    %cst_12 = arith.constant dense<0.000000e+00> : vector<2x8x8xf32>
    %52 = tpu.matmul %47, %49, %cst_12 {dimension_numbers = #tpu.dot_dimension_numbers<[2], [2], [1], [1], [0, 0, 0, 1, 1, 1], [0], [0]>} : vector<2x8x16xf32>, vector<2x8x16xf32>, vector<2x8x8xf32> -> vector<2x8x8xf32>
    "tpu.trace_stop"() : () -> ()
    %cst_13 = arith.constant dense<0xFF800000> : vector<2x8xf32>
    %53 = vector.multi_reduction <maximumf>, %52, %cst_13 [2] : vector<2x8x8xf32> to vector<2x8xf32>
    %54 = vector.shape_cast %53 : vector<2x8xf32> to vector<2x8x1xf32>
    %55 = vector.broadcast %54 : vector<2x8x1xf32> to vector<2x8x8xf32>
    %56 = arith.subf %52, %55 : vector<2x8x8xf32>
    %57 = math.exp %56 : vector<2x8x8xf32>
    %cst_14 = arith.constant dense<0.000000e+00> : vector<2x8xf32>
    %58 = vector.multi_reduction <add>, %57, %cst_14 [2] : vector<2x8x8xf32> to vector<2x8xf32>
    %59 = vector.shape_cast %58 : vector<2x8xf32> to vector<2x8x1xf32>
    %60 = tpu.reciprocal %59 : vector<2x8x1xf32> -> vector<2x8x1xf32>
    %61 = vector.broadcast %60 : vector<2x8x1xf32> to vector<2x8x8xf32>
    %62 = arith.mulf %57, %61 : vector<2x8x8xf32>
    "tpu.trace_start"() <{level = 10 : i32, message = "bqk,bkd->bqd"}> : () -> ()
    %cst_15 = arith.constant dense<0.000000e+00> : vector<2x8x16xf32>
    %63 = tpu.matmul %62, %51, %cst_15 {dimension_numbers = #tpu.dot_dimension_numbers<[2], [1], [1], [2], [0, 0, 0, 1, 1, 2], [0], [0]>} : vector<2x8x8xf32>, vector<2x8x16xf32>, vector<2x8x16xf32> -> vector<2x8x16xf32>
    "tpu.trace_stop"() : () -> ()
    %64 = vector.shape_cast %63 : vector<2x8x16xf32> to vector<16x16xf32>
    %65 = vector.extract_strided_slice %5 {offsets = [0, 48], sizes = [16, 16], strides = [1, 1]} : vector<16x128xf32> to vector<16x16xf32>
    %66 = vector.shape_cast %65 : vector<16x16xf32> to vector<2x8x16xf32>
    %67 = vector.extract_strided_slice %6 {offsets = [0, 48], sizes = [16, 16], strides = [1, 1]} : vector<16x128xf32> to vector<16x16xf32>
    %68 = vector.shape_cast %67 : vector<16x16xf32> to vector<2x8x16xf32>
    %69 = vector.extract_strided_slice %7 {offsets = [0, 48], sizes = [16, 16], strides = [1, 1]} : vector<16x128xf32> to vector<16x16xf32>
    %70 = vector.shape_cast %69 : vector<16x16xf32> to vector<2x8x16xf32>
    "tpu.trace_start"() <{level = 10 : i32, message = "bqd,bkd->bqk"}> : () -> ()
    %cst_16 = arith.constant dense<0.000000e+00> : vector<2x8x8xf32>
    %71 = tpu.matmul %66, %68, %cst_16 {dimension_numbers = #tpu.dot_dimension_numbers<[2], [2], [1], [1], [0, 0, 0, 1, 1, 1], [0], [0]>} : vector<2x8x16xf32>, vector<2x8x16xf32>, vector<2x8x8xf32> -> vector<2x8x8xf32>
    "tpu.trace_stop"() : () -> ()
    %cst_17 = arith.constant dense<0xFF800000> : vector<2x8xf32>
    %72 = vector.multi_reduction <maximumf>, %71, %cst_17 [2] : vector<2x8x8xf32> to vector<2x8xf32>
    %73 = vector.shape_cast %72 : vector<2x8xf32> to vector<2x8x1xf32>
    %74 = vector.broadcast %73 : vector<2x8x1xf32> to vector<2x8x8xf32>
    %75 = arith.subf %71, %74 : vector<2x8x8xf32>
    %76 = math.exp %75 : vector<2x8x8xf32>
    %cst_18 = arith.constant dense<0.000000e+00> : vector<2x8xf32>
    %77 = vector.multi_reduction <add>, %76, %cst_18 [2] : vector<2x8x8xf32> to vector<2x8xf32>
    %78 = vector.shape_cast %77 : vector<2x8xf32> to vector<2x8x1xf32>
    %79 = tpu.reciprocal %78 : vector<2x8x1xf32> -> vector<2x8x1xf32>
    %80 = vector.broadcast %79 : vector<2x8x1xf32> to vector<2x8x8xf32>
    %81 = arith.mulf %76, %80 : vector<2x8x8xf32>
    "tpu.trace_start"() <{level = 10 : i32, message = "bqk,bkd->bqd"}> : () -> ()
    %cst_19 = arith.constant dense<0.000000e+00> : vector<2x8x16xf32>
    %82 = tpu.matmul %81, %70, %cst_19 {dimension_numbers = #tpu.dot_dimension_numbers<[2], [1], [1], [2], [0, 0, 0, 1, 1, 2], [0], [0]>} : vector<2x8x8xf32>, vector<2x8x16xf32>, vector<2x8x16xf32> -> vector<2x8x16xf32>
    "tpu.trace_stop"() : () -> ()
    %83 = vector.shape_cast %82 : vector<2x8x16xf32> to vector<16x16xf32>
    %84 = vector.extract_strided_slice %5 {offsets = [0, 64], sizes = [16, 16], strides = [1, 1]} : vector<16x128xf32> to vector<16x16xf32>
    %85 = vector.shape_cast %84 : vector<16x16xf32> to vector<2x8x16xf32>
    %86 = vector.extract_strided_slice %6 {offsets = [0, 64], sizes = [16, 16], strides = [1, 1]} : vector<16x128xf32> to vector<16x16xf32>
    %87 = vector.shape_cast %86 : vector<16x16xf32> to vector<2x8x16xf32>
    %88 = vector.extract_strided_slice %7 {offsets = [0, 64], sizes = [16, 16], strides = [1, 1]} : vector<16x128xf32> to vector<16x16xf32>
    %89 = vector.shape_cast %88 : vector<16x16xf32> to vector<2x8x16xf32>
    "tpu.trace_start"() <{level = 10 : i32, message = "bqd,bkd->bqk"}> : () -> ()
    %cst_20 = arith.constant dense<0.000000e+00> : vector<2x8x8xf32>
    %90 = tpu.matmul %85, %87, %cst_20 {dimension_numbers = #tpu.dot_dimension_numbers<[2], [2], [1], [1], [0, 0, 0, 1, 1, 1], [0], [0]>} : vector<2x8x16xf32>, vector<2x8x16xf32>, vector<2x8x8xf32> -> vector<2x8x8xf32>
    "tpu.trace_stop"() : () -> ()
    %cst_21 = arith.constant dense<0xFF800000> : vector<2x8xf32>
    %91 = vector.multi_reduction <maximumf>, %90, %cst_21 [2] : vector<2x8x8xf32> to vector<2x8xf32>
    %92 = vector.shape_cast %91 : vector<2x8xf32> to vector<2x8x1xf32>
    %93 = vector.broadcast %92 : vector<2x8x1xf32> to vector<2x8x8xf32>
    %94 = arith.subf %90, %93 : vector<2x8x8xf32>
    %95 = math.exp %94 : vector<2x8x8xf32>
    %cst_22 = arith.constant dense<0.000000e+00> : vector<2x8xf32>
    %96 = vector.multi_reduction <add>, %95, %cst_22 [2] : vector<2x8x8xf32> to vector<2x8xf32>
    %97 = vector.shape_cast %96 : vector<2x8xf32> to vector<2x8x1xf32>
    %98 = tpu.reciprocal %97 : vector<2x8x1xf32> -> vector<2x8x1xf32>
    %99 = vector.broadcast %98 : vector<2x8x1xf32> to vector<2x8x8xf32>
    %100 = arith.mulf %95, %99 : vector<2x8x8xf32>
    "tpu.trace_start"() <{level = 10 : i32, message = "bqk,bkd->bqd"}> : () -> ()
    %cst_23 = arith.constant dense<0.000000e+00> : vector<2x8x16xf32>
    %101 = tpu.matmul %100, %89, %cst_23 {dimension_numbers = #tpu.dot_dimension_numbers<[2], [1], [1], [2], [0, 0, 0, 1, 1, 2], [0], [0]>} : vector<2x8x8xf32>, vector<2x8x16xf32>, vector<2x8x16xf32> -> vector<2x8x16xf32>
    "tpu.trace_stop"() : () -> ()
    %102 = vector.shape_cast %101 : vector<2x8x16xf32> to vector<16x16xf32>
    %103 = vector.extract_strided_slice %5 {offsets = [0, 80], sizes = [16, 16], strides = [1, 1]} : vector<16x128xf32> to vector<16x16xf32>
    %104 = vector.shape_cast %103 : vector<16x16xf32> to vector<2x8x16xf32>
    %105 = vector.extract_strided_slice %6 {offsets = [0, 80], sizes = [16, 16], strides = [1, 1]} : vector<16x128xf32> to vector<16x16xf32>
    %106 = vector.shape_cast %105 : vector<16x16xf32> to vector<2x8x16xf32>
    %107 = vector.extract_strided_slice %7 {offsets = [0, 80], sizes = [16, 16], strides = [1, 1]} : vector<16x128xf32> to vector<16x16xf32>
    %108 = vector.shape_cast %107 : vector<16x16xf32> to vector<2x8x16xf32>
    "tpu.trace_start"() <{level = 10 : i32, message = "bqd,bkd->bqk"}> : () -> ()
    %cst_24 = arith.constant dense<0.000000e+00> : vector<2x8x8xf32>
    %109 = tpu.matmul %104, %106, %cst_24 {dimension_numbers = #tpu.dot_dimension_numbers<[2], [2], [1], [1], [0, 0, 0, 1, 1, 1], [0], [0]>} : vector<2x8x16xf32>, vector<2x8x16xf32>, vector<2x8x8xf32> -> vector<2x8x8xf32>
    "tpu.trace_stop"() : () -> ()
    %cst_25 = arith.constant dense<0xFF800000> : vector<2x8xf32>
    %110 = vector.multi_reduction <maximumf>, %109, %cst_25 [2] : vector<2x8x8xf32> to vector<2x8xf32>
    %111 = vector.shape_cast %110 : vector<2x8xf32> to vector<2x8x1xf32>
    %112 = vector.broadcast %111 : vector<2x8x1xf32> to vector<2x8x8xf32>
    %113 = arith.subf %109, %112 : vector<2x8x8xf32>
    %114 = math.exp %113 : vector<2x8x8xf32>
    %cst_26 = arith.constant dense<0.000000e+00> : vector<2x8xf32>
    %115 = vector.multi_reduction <add>, %114, %cst_26 [2] : vector<2x8x8xf32> to vector<2x8xf32>
    %116 = vector.shape_cast %115 : vector<2x8xf32> to vector<2x8x1xf32>
    %117 = tpu.reciprocal %116 : vector<2x8x1xf32> -> vector<2x8x1xf32>
    %118 = vector.broadcast %117 : vector<2x8x1xf32> to vector<2x8x8xf32>
    %119 = arith.mulf %114, %118 : vector<2x8x8xf32>
    "tpu.trace_start"() <{level = 10 : i32, message = "bqk,bkd->bqd"}> : () -> ()
    %cst_27 = arith.constant dense<0.000000e+00> : vector<2x8x16xf32>
    %120 = tpu.matmul %119, %108, %cst_27 {dimension_numbers = #tpu.dot_dimension_numbers<[2], [1], [1], [2], [0, 0, 0, 1, 1, 2], [0], [0]>} : vector<2x8x8xf32>, vector<2x8x16xf32>, vector<2x8x16xf32> -> vector<2x8x16xf32>
    "tpu.trace_stop"() : () -> ()
    %121 = vector.shape_cast %120 : vector<2x8x16xf32> to vector<16x16xf32>
    %122 = vector.extract_strided_slice %5 {offsets = [0, 96], sizes = [16, 16], strides = [1, 1]} : vector<16x128xf32> to vector<16x16xf32>
    %123 = vector.shape_cast %122 : vector<16x16xf32> to vector<2x8x16xf32>
    %124 = vector.extract_strided_slice %6 {offsets = [0, 96], sizes = [16, 16], strides = [1, 1]} : vector<16x128xf32> to vector<16x16xf32>
    %125 = vector.shape_cast %124 : vector<16x16xf32> to vector<2x8x16xf32>
    %126 = vector.extract_strided_slice %7 {offsets = [0, 96], sizes = [16, 16], strides = [1, 1]} : vector<16x128xf32> to vector<16x16xf32>
    %127 = vector.shape_cast %126 : vector<16x16xf32> to vector<2x8x16xf32>
    "tpu.trace_start"() <{level = 10 : i32, message = "bqd,bkd->bqk"}> : () -> ()
    %cst_28 = arith.constant dense<0.000000e+00> : vector<2x8x8xf32>
    %128 = tpu.matmul %123, %125, %cst_28 {dimension_numbers = #tpu.dot_dimension_numbers<[2], [2], [1], [1], [0, 0, 0, 1, 1, 1], [0], [0]>} : vector<2x8x16xf32>, vector<2x8x16xf32>, vector<2x8x8xf32> -> vector<2x8x8xf32>
    "tpu.trace_stop"() : () -> ()
    %cst_29 = arith.constant dense<0xFF800000> : vector<2x8xf32>
    %129 = vector.multi_reduction <maximumf>, %128, %cst_29 [2] : vector<2x8x8xf32> to vector<2x8xf32>
    %130 = vector.shape_cast %129 : vector<2x8xf32> to vector<2x8x1xf32>
    %131 = vector.broadcast %130 : vector<2x8x1xf32> to vector<2x8x8xf32>
    %132 = arith.subf %128, %131 : vector<2x8x8xf32>
    %133 = math.exp %132 : vector<2x8x8xf32>
    %cst_30 = arith.constant dense<0.000000e+00> : vector<2x8xf32>
    %134 = vector.multi_reduction <add>, %133, %cst_30 [2] : vector<2x8x8xf32> to vector<2x8xf32>
    %135 = vector.shape_cast %134 : vector<2x8xf32> to vector<2x8x1xf32>
    %136 = tpu.reciprocal %135 : vector<2x8x1xf32> -> vector<2x8x1xf32>
    %137 = vector.broadcast %136 : vector<2x8x1xf32> to vector<2x8x8xf32>
    %138 = arith.mulf %133, %137 : vector<2x8x8xf32>
    "tpu.trace_start"() <{level = 10 : i32, message = "bqk,bkd->bqd"}> : () -> ()
    %cst_31 = arith.constant dense<0.000000e+00> : vector<2x8x16xf32>
    %139 = tpu.matmul %138, %127, %cst_31 {dimension_numbers = #tpu.dot_dimension_numbers<[2], [1], [1], [2], [0, 0, 0, 1, 1, 2], [0], [0]>} : vector<2x8x8xf32>, vector<2x8x16xf32>, vector<2x8x16xf32> -> vector<2x8x16xf32>
    "tpu.trace_stop"() : () -> ()
    %140 = vector.shape_cast %139 : vector<2x8x16xf32> to vector<16x16xf32>
    %141 = vector.extract_strided_slice %5 {offsets = [0, 112], sizes = [16, 16], strides = [1, 1]} : vector<16x128xf32> to vector<16x16xf32>
    %142 = vector.shape_cast %141 : vector<16x16xf32> to vector<2x8x16xf32>
    %143 = vector.extract_strided_slice %6 {offsets = [0, 112], sizes = [16, 16], strides = [1, 1]} : vector<16x128xf32> to vector<16x16xf32>
    %144 = vector.shape_cast %143 : vector<16x16xf32> to vector<2x8x16xf32>
    %145 = vector.extract_strided_slice %7 {offsets = [0, 112], sizes = [16, 16], strides = [1, 1]} : vector<16x128xf32> to vector<16x16xf32>
    %146 = vector.shape_cast %145 : vector<16x16xf32> to vector<2x8x16xf32>
    "tpu.trace_start"() <{level = 10 : i32, message = "bqd,bkd->bqk"}> : () -> ()
    %cst_32 = arith.constant dense<0.000000e+00> : vector<2x8x8xf32>
    %147 = tpu.matmul %142, %144, %cst_32 {dimension_numbers = #tpu.dot_dimension_numbers<[2], [2], [1], [1], [0, 0, 0, 1, 1, 1], [0], [0]>} : vector<2x8x16xf32>, vector<2x8x16xf32>, vector<2x8x8xf32> -> vector<2x8x8xf32>
    "tpu.trace_stop"() : () -> ()
    %cst_33 = arith.constant dense<0xFF800000> : vector<2x8xf32>
    %148 = vector.multi_reduction <maximumf>, %147, %cst_33 [2] : vector<2x8x8xf32> to vector<2x8xf32>
    %149 = vector.shape_cast %148 : vector<2x8xf32> to vector<2x8x1xf32>
    %150 = vector.broadcast %149 : vector<2x8x1xf32> to vector<2x8x8xf32>
    %151 = arith.subf %147, %150 : vector<2x8x8xf32>
    %152 = math.exp %151 : vector<2x8x8xf32>
    %cst_34 = arith.constant dense<0.000000e+00> : vector<2x8xf32>
    %153 = vector.multi_reduction <add>, %152, %cst_34 [2] : vector<2x8x8xf32> to vector<2x8xf32>
    %154 = vector.shape_cast %153 : vector<2x8xf32> to vector<2x8x1xf32>
    %155 = tpu.reciprocal %154 : vector<2x8x1xf32> -> vector<2x8x1xf32>
    %156 = vector.broadcast %155 : vector<2x8x1xf32> to vector<2x8x8xf32>
    %157 = arith.mulf %152, %156 : vector<2x8x8xf32>
    "tpu.trace_start"() <{level = 10 : i32, message = "bqk,bkd->bqd"}> : () -> ()
    %cst_35 = arith.constant dense<0.000000e+00> : vector<2x8x16xf32>
    %158 = tpu.matmul %157, %146, %cst_35 {dimension_numbers = #tpu.dot_dimension_numbers<[2], [1], [1], [2], [0, 0, 0, 1, 1, 2], [0], [0]>} : vector<2x8x8xf32>, vector<2x8x16xf32>, vector<2x8x16xf32> -> vector<2x8x16xf32>
    "tpu.trace_stop"() : () -> ()
    %159 = vector.shape_cast %158 : vector<2x8x16xf32> to vector<16x16xf32>
    %160 = tpu.concatenate %26, %45, %64, %83, %102, %121, %140, %159 in 1 : vector<16x16xf32>, vector<16x16xf32>, vector<16x16xf32>, vector<16x16xf32>, vector<16x16xf32>, vector<16x16xf32>, vector<16x16xf32>, vector<16x16xf32> -> vector<16x128xf32>
    %c0_36 = arith.constant 0 : index
    %c0_37 = arith.constant 0 : index
    %161 = vector.load %arg3[%c0_36, %c0_37] : memref<128x32xf32, #tpu.memory_space<vmem>>, vector<128x32xf32>
    %cst_38 = arith.constant dense<0.000000e+00> : vector<16x32xf32>
    %162 = tpu.matmul %160, %161, %cst_38 {dimension_numbers = #tpu.dot_dimension_numbers<[1], [0], [0], [1], [0, 0, 1, 1], [], []>} : vector<16x128xf32>, vector<128x32xf32>, vector<16x32xf32> -> vector<16x32xf32>
    %c0_39 = arith.constant 0 : index
    %c0_40 = arith.constant 0 : index
    %163 = vector.load %arg4[%c0_39, %c0_40] : memref<1x32xf32, #tpu.memory_space<vmem>>, vector<1x32xf32>
    %164 = vector.broadcast %163 : vector<1x32xf32> to vector<16x32xf32>
    %165 = arith.addf %162, %164 : vector<16x32xf32>
    %c0_41 = arith.constant 0 : index
    %c0_42 = arith.constant 0 : index
    %166 = vector.load %arg5[%c0_41, %c0_42] : memref<16x32xf32, #tpu.memory_space<vmem>>, vector<16x32xf32>
    tpu.vector_store %arg5[%c0_41, %c0_42], %165 {strides = array<i32>} : memref<16x32xf32, #tpu.memory_space<vmem>>, vector<16x32xf32>,
    return
  }
  func.func @transform_0(%arg0: i32) -> (i32, i32) {
    %c0_i32 = arith.constant 0 : i32
    %c0_i32_0 = arith.constant 0 : i32
    return %arg0, %c0_i32 : i32, i32
  }
  func.func @transform_1(%arg0: i32) -> (i32, i32) {
    %c0_i32 = arith.constant 0 : i32
    %c0_i32_0 = arith.constant 0 : i32
    %c0_i32_1 = arith.constant 0 : i32
    return %c0_i32, %c0_i32_0 : i32, i32
  }
  func.func @transform_2(%arg0: i32) -> (i32, i32) {
    %c0_i32 = arith.constant 0 : i32
    %c0_i32_0 = arith.constant 0 : i32
    %c0_i32_1 = arith.constant 0 : i32
    return %c0_i32, %c0_i32_0 : i32, i32
  }
  func.func @transform_3(%arg0: i32) -> (i32, i32) {
    %c0_i32 = arith.constant 0 : i32
    %c0_i32_0 = arith.constant 0 : i32
    %c0_i32_1 = arith.constant 0 : i32
    return %c0_i32, %c0_i32_0 : i32, i32
  }
  func.func @transform_4(%arg0: i32) -> (i32, i32) {
    %c0_i32 = arith.constant 0 : i32
    %c0_i32_0 = arith.constant 0 : i32
    return %arg0, %c0_i32 : i32, i32
  }
}

</mosaic_0001>

<bundles_post_ra>
// kernel: tpu_custom_call.1
= control target key start
LH: loop header
LB: loop body
LE: loop exit
PB: predicated region body
PF: predicated region fallthrough
CT: control target
= control target key end

     0   :  { %v3548_v7 = vmov 0.0   ;;  %s4038_s0 = inlined_call_operand.vmem [shape: f32[16,32], index: 0, kind: input, shape index: {}]   ;;  %s4039_s1 = inlined_call_operand.vmem [shape: f32[32,384], index: 1, kind: input, shape index: {}]   ;;  %s4040_s2 = inlined_call_operand.vmem [shape: f32[128,32], index: 2, kind: input, shape index: {}]   ;;  %s4041_s3 = inlined_call_operand.vmem [shape: f32[1,32], index: 3, kind: input, shape index: {}]   ;;  %s4042_s4 = inlined_call_operand.hbm [shape: f32[16,32], index: 4, kind: output, shape index: {}]  }
   0x1   :  { %v21_v0 = vld [vmem:[%s4039_s1 + $0x8] sm:$0xff]  ;;  %v24_v1 = vld [vmem:[%s4039_s1 + $0x20] sm:$0xff]  ;;  %v23_v4 = vld [vmem:[%s4039_s1 + $0x18] sm:$0xff]  ;;  %103 = vmatprep.mubr.f32.mxu0 %v3548_v7  ;;  %3190 = vmatprep.subr.mxu1 %v3548_v7 }
   0x2   :  { %v20_v2 = vld [vmem:[%s4039_s1] sm:$0xff]  ;;  %v3365_v3 = vpack.c.bf16 %v24_v1, %v21_v0  ;;  %v27_v5 = vld [vmem:[%s4039_s1 + $0x38] sm:$0xff]  ;;  %v30_v6 = vld [vmem:[%s4039_s1 + $0x50] sm:$0xff] }
   0x3   :  { %v3367_v8 = vpack.c.bf16 %v23_v4, %v20_v2  ;;  %v3369_v9 = vpack.c.bf16 %v30_v6, %v27_v5  ;;  %v26_v10 = vld [vmem:[%s4039_s1 + $0x30] sm:$0xff]  ;;  %v29_v11 = vld [vmem:[%s4039_s1 + $0x48] sm:$0xff] }
   0x4   :  { %3366 = vmatprep.subr.bf16.mxu0 %v3365_v3  ;;  %v22_v12 = vld [vmem:[%s4039_s1 + $0x10] sm:$0xff]  ;;  %v25_v13 = vld [vmem:[%s4039_s1 + $0x28] sm:$0xff]  ;;  %v3371_v14 = vpack.c.bf16 %v29_v11, %v26_v10 }
   0x5   :  { %3368 = vmatpush1.bf16.msra.mxu0 %v3367_v8 }
   0x6   :  { %9 = vsyncpa [#allocation3], 0  ;;  %3370 = vmatprep.subr.bf16.mxu0 %v3369_v9  ;;  %v3373_v15 = vpack.c.bf16 %v25_v13, %v22_v12  ;;  %v28_v16 = vld [vmem:[%s4039_s1 + $0x40] sm:$0xff]  ;;  %v31_v17 = vld [vmem:[%s4039_s1 + $0x58] sm:$0xff]  ;;  %vm32_vm0 = vcmask 261120   ;;  %vm3549_vm1 = vmmov 0  }
   0x7   :  { %v18_v18 = vld [vmem:[%s4038_s0] sm:$0xff]  ;;  %v3377_v19 = vpack.c.bf16 %v31_v17, %v28_v16  ;;  %v19_v20 = vld [vmem:[%s4038_s0 + $0x8] sm:$0xff]  ;;  %3192 = vmatprep.mubr.msk.f32.mxu1 %vm3549_vm1, %v3548_v7  ;;  %vm193_vm2 = vcmask 130048   ;;  %s3550_s0 = smov 112   ;;  %vm346_vm3 = vcmask 64512   ;;  %s3551_s1 = smov 96  }
   0x8   :  { %s3552_s17 = smov 80   ;;  %s3553_s18 = smov 64   ;;  %vm2887_vm4 = vcmask 392192   ;;  %vm2890_vm5 = vcmask 523264   ;;  %vm2893_vm6 = vcmask 654336   ;;  %vm2896_vm7 = vcmask 785408  }
   0x9   :  { %3372 = vmatpush1.bf16.msra.mxu0 %v3371_v14  ;;  %s3554_s19 = smov 48   ;;  %s3555_s20 = smov 32   ;;  %vm2899_vm8 = vcmask 916480  }
   0xa   :  { %3374 = vmatprep.subr.bf16.mxu0 %v3373_v15  ;;  %s3556_s21 = smov 16   ;;  %s3557_s27 = smov [#allocation2]  }
   0xb   :  { %s3007_s28 = sshll.u32 %s3557_s27, 4  ;;  %s3008_s28 = int_to_ptr.vmem [resolvable:$true] %s3007_s28 }
   0xc   :  { %3018 = vmatmul.mubr.msk.f32.vlgmr.msra.gmra.mrb[0].mxu0 %vm32_vm0, %v18_v18  ;;  %s3524_s29 = scalar_lea.vmem %s3008_s28, 256  ;;  %p3529_p1 = scmp.lt.s32.totalorder %s3008_s28, %s3008_s28 }
   0xd   :  { %109 = vmatprep.mubr.f32.mxu0 %v3548_v7  ;;  %3376 = vmatpush3.bf16.msra.mxu0 %v3373_v15  ;;  %p3525_p0 = scmp.ne.s32.totalorder %s3008_s28, %s3524_s29  ;;  %p3530_p2 = scmp.lt.s32.totalorder %s3524_s29, %s3524_s29 }
   0xe   :  { %3378 = vmatprep.subr.bf16.mxu0 %v3377_v19 }
   0xf   :  { %p3531_p3 = por %p3530_p2, %p3529_p1 }
  0x10   :  { %3019 = vmatmul.mubr.msk.f32.gmra.mrb[2].mxu0 %vm32_vm0, %v19_v20 }
  0x11   :  { %3380 = vmatpush3.bf16.msra.mxu0 %v3377_v19  ;;  %3167 = vmatprep.mubr.msk.f32.mxu0 %vm32_vm0, %v18_v18  ;;  %p3532_p4 = pnand %p3531_p3, %p3525_p0 }
  0x12   :  { %3170 = vmatprep.subr.mxu0 %v3548_v7 }
  0x14   :  { %3168 = vmatmul.mubr.msk.f32.vlgmr.msra.gmra.mrb[4].mxu0 %vm32_vm0, %v19_v20 }
  0x15   :  { %3172 = vmatprep.mubr.msk.f32.mxu0 %vm3549_vm1, %v3548_v7 }
  0xdf   :  { %v105_v21 = vpop.f32.mrb[0].mxu0 }
  0xe0   :  { %v3639_v22 = vpop.f32.mrb[1].mxu0  ;;  %v3643_v23 = vmul.f32 0.25, %v105_v21 }
  0xe1   :  { %3171 = vmatpush3.xpose.msk.msra.mxu0 %vm193_vm2, %v3639_v22 }
  0xe2   :  { %3175 = vmatprep.subr.mxu0 %v3548_v7 }
  0xe3   :  { %v111_v24 = vpop.f32.mrb[2].mxu0 }
  0xe4   :  { %v3646_v25 = vmul.f32 0.25, %v111_v24  ;;  %v3648_v26 = vpop.f32.mrb[3].mxu0  ;;  %3173 = vmatmul.mubr.msk.f32.vlgmr.msra.gmra.mrb[6].mxu0 %vm193_vm2, %v3643_v23 }
  0xe5   :  { %595 = vrot.lane.b32.xlu1 %v3648_v26, %s3550_s0  ;;  %3176 = vmatpush3.xpose.msk.msra.mxu0 %vm193_vm2, %v3648_v26 }
  0xe6   :  { %3177 = vmatprep.mubr.msk.f32.mxu0 %vm3549_vm1, %v3548_v7  ;;  %3180 = vmatprep.subr.mxu0 %v3548_v7 }
  0xe7   :  { %v3659_v27 = vpop.f32.mrb[4].mxu0 }
  0xe8   :  { %3178 = vmatmul.mubr.msk.f32.vlgmr.msra.gmra.mrb[8].mxu0 %vm193_vm2, %v3646_v25  ;;  %v3663_v28 = vpop.f32.mrb[5].mxu0 }
  0xe9   :  { %515 = vrot.lane.b32.xlu1 %v3643_v23, %s3550_s0  ;;  %3181 = vmatpush3.msra.mxu0 %v3663_v28 }
  0xea   :  { %3182 = vmatprep.mubr.msk.f32.mxu0 %vm3549_vm1, %v3548_v7  ;;  %3185 = vmatprep.subr.mxu0 %v3548_v7 }
 0x157   :  { %v596_v39 = vpop.permute.xlu1 %595 }
 0x15b   :  { %v516_v43 = vpop.permute.xlu1 %515 }
 0x1b7   :  { %v266_v29 = vpop.f32.mrb[6].mxu0 }
 0x1b8   :  { %v3174_v30 = vpop.f32.mrb[7].mxu0  ;;  %v347_v31 = vsel %vm346_vm3, %v266_v29, -inf }
 0x1b9   :  { %348 = vmax.xlane.f32.xlu0 %v347_v31 }
 0x1bb   :  { %v342_v32 = vpop.f32.mrb[8].mxu0 }
 0x1bc   :  { %v3179_v33 = vpop.f32.mrb[9].mxu0  ;;  %v350_v34 = vsel %vm346_vm3, %v342_v32, -inf }
 0x1bd   :  { %351 = vmax.xlane.f32.xlu0 %v350_v34 }
 0x1d3   :  { %517 = vrot.lane.b32.xlu0 %v3639_v22, %s3550_s0 }
 0x246   :  { %v349_v35 = vpop.xlane.xlu0 %348 }
 0x247   :  { %v353_v36 = vsub.f32 %v266_v29, %v349_v35 }
 0x249   :  { %v355_v37 = vmul.f32 1.442695, %v353_v36 }
 0x24a   :  { %v352_v38 = vpop.xlane.xlu0 %351 }
 0x24b   :  { %3460 = vpow2.f32 %v355_v37  ;;  %v354_v40 = vsub.f32 %v342_v32, %v352_v38 }
 0x24d   :  { %v357_v41 = vmul.f32 1.442695, %v354_v40 }
 0x24e   :  { %v518_v42 = vpop.permute.xlu0 %517 }
 0x24f   :  { %3462 = vpow2.f32 %v357_v41  ;;  %3191 = vmatpush3.xpose.msk.msra.mxu1 %vm193_vm2, %v518_v42 }
 0x250   :  { %3200 = vmatprep.subr.mxu1 %v3548_v7 }
 0x252   :  { %3193 = vmatmul.mubr.msk.f32.vlgmr.msra.gmra.mrb[0].mxu1 %vm193_vm2, %v516_v43 }
 0x253   :  { %3202 = vmatprep.mubr.msk.f32.mxu1 %vm3549_vm1, %v3548_v7 }
 0x255   :  { %v3461_v44 = vpop.eup %3460 }
 0x256   :  { %v359_v45 = vsel %vm346_vm3, %v3461_v44, 0.0 }
 0x257   :  { %360 = vadd.xlane.f32.xlu1 %v359_v45 }
 0x259   :  { %v3463_v46 = vpop.eup %3462 }
 0x25a   :  { %v362_v47 = vsel %vm346_vm3, %v3463_v46, 0.0 }
 0x25b   :  { %363 = vadd.xlane.f32.xlu1 %v362_v47 }
 0x26c   :  { %593 = vrot.lane.b32.xlu1 %v3646_v25, %s3550_s0 }
 0x2e4   :  { %v361_v48 = vpop.xlane.xlu1 %360 }
 0x2e5   :  { %3464 = vrcp.f32 %v361_v48 }
 0x2e8   :  { %v364_v49 = vpop.xlane.xlu1 %363 }
 0x2e9   :  { %3466 = vrcp.f32 %v364_v49 }
 0x2ec   :  { %v594_v54 = vpop.permute.xlu1 %593 }
 0x2ef   :  { %v3465_v50 = vpop.eup %3464 }
 0x2f0   :  { %v367_v51 = vmul.f32 %v3465_v50, %v3461_v44 }
 0x2f2   :  { %3183 = vmatmul.mubr.msk.f32.vlgmr.msra.gmra.mrb[10].mxu0 %vm346_vm3, %v367_v51 }
 0x2f3   :  { %v3467_v52 = vpop.eup %3466  ;;  %3186 = vmatpush3.msra.mxu0 %v3659_v27  ;;  %3187 = vmatprep.mubr.msk.f32.mxu0 %vm3549_vm1, %v3548_v7 }
 0x2f4   :  { %v368_v53 = vmul.f32 %v3467_v52, %v3463_v46  ;;  %3195 = vmatprep.subr.mxu0 %v3548_v7 }
 0x2f6   :  { %3188 = vmatmul.mubr.msk.f32.vlgmr.msra.gmra.mrb[12].mxu0 %vm346_vm3, %v368_v53 }
 0x2f7   :  { %3197 = vmatprep.mubr.msk.f32.mxu0 %vm3549_vm1, %v3548_v7 }
 0x2fa   :  { %3196 = vmatpush3.xpose.msk.msra.mxu0 %vm193_vm2, %v596_v39 }
 0x2fb   :  { %3205 = vmatprep.subr.mxu0 %v3548_v7 }
 0x2fd   :  { %3198 = vmatmul.mubr.msk.f32.vlgmr.msra.gmra.mrb[14].mxu0 %vm193_vm2, %v594_v54 }
 0x2fe   :  { %3207 = vmatprep.mubr.msk.f32.mxu0 %vm3549_vm1, %v3548_v7 }
 0x325   :  { %v589_v55 = vpop.f32.mrb[0].mxu1 }
 0x326   :  { %v3194_v56 = vpop.f32.mrb[1].mxu1  ;;  %v671_v57 = vsel %vm346_vm3, %v589_v55, -inf }
 0x327   :  { %672 = vmax.xlane.f32.xlu0 %v671_v57 }
 0x3b4   :  { %v673_v58 = vpop.xlane.xlu0 %672 }
 0x3b5   :  { %v677_v59 = vsub.f32 %v589_v55, %v673_v58 }
 0x3b7   :  { %v679_v60 = vmul.f32 1.442695, %v677_v59 }
 0x3b9   :  { %3468 = vpow2.f32 %v679_v60 }
 0x3c3   :  { %v3469_v61 = vpop.eup %3468 }
 0x3c4   :  { %v683_v62 = vsel %vm346_vm3, %v3469_v61, 0.0 }
 0x3c5   :  { %684 = vadd.xlane.f32.xlu0 %v683_v62  ;;  %v3699_v63 = vpop.f32.mrb[10].mxu0 }
 0x3c6   :  { %v3184_v0 = vpop.f32.mrb[11].mxu0 }
 0x3c9   :  { %v3701_v1 = vpop.f32.mrb[12].mxu0 }
 0x3ca   :  { %v3189_v2 = vpop.f32.mrb[13].mxu0 }
 0x3d0   :  { %v667_v3 = vpop.f32.mrb[14].mxu0 }
 0x3d1   :  { %v3199_v4 = vpop.f32.mrb[15].mxu0  ;;  %v674_v5 = vsel %vm346_vm3, %v667_v3, -inf }
 0x3d2   :  { %675 = vmax.xlane.f32.xlu1 %v674_v5 }
 0x3db   :  { %694 = vrot.lane.b32.xlu0 %v3663_v28, %s3550_s0 }
 0x3e3   :  { %771 = vrot.lane.b32.xlu1 %v3659_v27, %s3550_s0 }
 0x3e7   :  { %849 = vrot.lane.b32.xlu1 %v3639_v22, %s3551_s1 }
 0x3eb   :  { %927 = vrot.lane.b32.xlu1 %v3648_v26, %s3551_s1 }
 0x3ef   :  { %925 = vrot.lane.b32.xlu1 %v3646_v25, %s3551_s1 }
 0x452   :  { %v685_v6 = vpop.xlane.xlu0 %684 }
 0x453   :  { %3470 = vrcp.f32 %v685_v6 }
 0x456   :  { %v695_v8 = vpop.permute.xlu0 %694 }
 0x457   :  { %3201 = vmatpush3.msra.mxu1 %v695_v8 }
 0x458   :  { %3210 = vmatprep.subr.mxu1 %v3548_v7 }
 0x45d   :  { %v3471_v9 = vpop.eup %3470 }
 0x45e   :  { %v691_v10 = vmul.f32 %v3471_v9, %v3469_v61 }
 0x45f   :  { %v676_v11 = vpop.xlane.xlu1 %675 }
 0x460   :  { %v678_v12 = vsub.f32 %v667_v3, %v676_v11  ;;  %3203 = vmatmul.mubr.msk.f32.vlgmr.msra.gmra.mrb[2].mxu1 %vm346_vm3, %v691_v10 }
 0x461   :  { %3212 = vmatprep.mubr.msk.f32.mxu1 %vm3549_vm1, %v3548_v7 }
 0x462   :  { %v681_v13 = vmul.f32 1.442695, %v678_v12 }
 0x463   :  { %v772_v14 = vpop.permute.xlu1 %771 }
 0x464   :  { %3472 = vpow2.f32 %v681_v13  ;;  %3206 = vmatpush3.msra.mxu0 %v772_v14 }
 0x465   :  { %3215 = vmatprep.subr.mxu0 %v3548_v7 }
 0x467   :  { %v850_v15 = vpop.permute.xlu1 %849 }
 0x468   :  { %3211 = vmatpush3.xpose.msk.msra.mxu1 %vm193_vm2, %v850_v15 }
 0x469   :  { %3220 = vmatprep.subr.mxu1 %v3548_v7 }
 0x46b   :  { %v928_v21 = vpop.permute.xlu1 %927 }
 0x46e   :  { %v3473_v16 = vpop.eup %3472 }
 0x46f   :  { %v686_v17 = vsel %vm346_vm3, %v3473_v16, 0.0  ;;  %v926_v29 = vpop.permute.xlu1 %925 }
 0x470   :  { %687 = vadd.xlane.f32.xlu0 %v686_v17 }
 0x486   :  { %847 = vrot.lane.b32.xlu0 %v3643_v23, %s3551_s1 }
 0x4fd   :  { %v688_v18 = vpop.xlane.xlu0 %687 }
 0x4fe   :  { %3474 = vrcp.f32 %v688_v18 }
 0x501   :  { %v848_v19 = vpop.permute.xlu0 %847 }
 0x502   :  { %3213 = vmatmul.mubr.msk.f32.vlgmr.msra.gmra.mrb[4].mxu1 %vm193_vm2, %v848_v19 }
 0x503   :  { %3222 = vmatprep.mubr.msk.f32.mxu1 %vm3549_vm1, %v3548_v7 }
 0x508   :  { %v3475_v20 = vpop.eup %3474 }
 0x509   :  { %v692_v24 = vmul.f32 %v3475_v20, %v3473_v16 }
 0x50b   :  { %3208 = vmatmul.mubr.msk.f32.vlgmr.msra.gmra.mrb[16].mxu0 %vm346_vm3, %v692_v24 }
 0x50c   :  { %3216 = vmatpush3.xpose.msk.msra.mxu0 %vm193_vm2, %v928_v21  ;;  %3217 = vmatprep.mubr.msk.f32.mxu0 %vm3549_vm1, %v3548_v7 }
 0x50d   :  { %3225 = vmatprep.subr.mxu0 %v3548_v7 }
 0x50f   :  { %3218 = vmatmul.mubr.msk.f32.vlgmr.msra.gmra.mrb[18].mxu0 %vm193_vm2, %v926_v29 }
 0x510   :  { %3227 = vmatprep.mubr.msk.f32.mxu0 %vm3549_vm1, %v3548_v7 }
 0x533   :  { %v3735_v30 = vpop.f32.mrb[2].mxu1 }
 0x534   :  { %v3204_v31 = vpop.f32.mrb[3].mxu1 }
 0x5d5   :  { %v921_v32 = vpop.f32.mrb[4].mxu1 }
 0x5d6   :  { %v3214_v33 = vpop.f32.mrb[5].mxu1  ;;  %v1003_v34 = vsel %vm346_vm3, %v921_v32, -inf }
 0x5d7   :  { %1004 = vmax.xlane.f32.xlu0 %v1003_v34 }
 0x5de   :  { %v3738_v35 = vpop.f32.mrb[16].mxu0 }
 0x5df   :  { %v3425_v36 = vpack.i.bf16 %v3738_v35, %v3735_v30  ;;  %v3209_v37 = vpop.f32.mrb[17].mxu0 }
 0x5e2   :  { %v999_v38 = vpop.f32.mrb[18].mxu0 }
 0x5e3   :  { %v3219_v39 = vpop.f32.mrb[19].mxu0  ;;  %v1006_v40 = vsel %vm346_vm3, %v999_v38, -inf }
 0x5e4   :  { %1007 = vmax.xlane.f32.xlu1 %v1006_v40 }
 0x5f5   :  { %1101 = vrot.lane.b32.xlu1 %v3659_v27, %s3551_s1 }
 0x5f9   :  { %1179 = vrot.lane.b32.xlu1 %v3639_v22, %s3552_s17 }
 0x5fd   :  { %1257 = vrot.lane.b32.xlu1 %v3648_v26, %s3552_s17 }
 0x601   :  { %1255 = vrot.lane.b32.xlu1 %v3646_v25, %s3552_s17 }
 0x664   :  { %v1005_v41 = vpop.xlane.xlu0 %1004 }
 0x665   :  { %v1009_v42 = vsub.f32 %v921_v32, %v1005_v41 }
 0x667   :  { %v1011_v43 = vmul.f32 1.442695, %v1009_v42 }
 0x669   :  { %3476 = vpow2.f32 %v1011_v43 }
 0x671   :  { %v1008_v44 = vpop.xlane.xlu1 %1007 }
 0x672   :  { %v1010_v48 = vsub.f32 %v999_v38, %v1008_v44 }
 0x673   :  { %v3477_v45 = vpop.eup %3476 }
 0x674   :  { %v1015_v46 = vsel %vm346_vm3, %v3477_v45, 0.0  ;;  %v1013_v49 = vmul.f32 1.442695, %v1010_v48 }
 0x675   :  { %1016 = vadd.xlane.f32.xlu0 %v1015_v46  ;;  %v1102_v47 = vpop.permute.xlu1 %1101 }
 0x676   :  { %3226 = vmatpush3.msra.mxu0 %v1102_v47  ;;  %3478 = vpow2.f32 %v1013_v49 }
 0x677   :  { %3235 = vmatprep.subr.mxu0 %v3548_v7 }
 0x679   :  { %v1180_v56 = vpop.permute.xlu1 %1179 }
 0x67d   :  { %v1258_v60 = vpop.permute.xlu1 %1257 }
 0x680   :  { %v3479_v50 = vpop.eup %3478 }
 0x681   :  { %v1018_v51 = vsel %vm346_vm3, %v3479_v50, 0.0  ;;  %v1256_v62 = vpop.permute.xlu1 %1255 }
 0x68b   :  { %1025 = vrot.lane.b32.xlu0 %v3663_v28, %s3551_s1 }
 0x6aa   :  { %1019 = vadd.xlane.f32.xlu0 %v1018_v51 }
 0x6c0   :  { %1177 = vrot.lane.b32.xlu0 %v3643_v23, %s3552_s17 }
 0x702   :  { %v1017_v52 = vpop.xlane.xlu0 %1016 }
 0x703   :  { %3480 = vrcp.f32 %v1017_v52 }
 0x706   :  { %v1026_v53 = vpop.permute.xlu0 %1025 }
 0x707   :  { %3221 = vmatpush3.msra.mxu1 %v1026_v53 }
 0x708   :  { %3230 = vmatprep.subr.mxu1 %v3548_v7 }
 0x70d   :  { %v3481_v54 = vpop.eup %3480 }
 0x70e   :  { %v1023_v55 = vmul.f32 %v3481_v54, %v3477_v45 }
 0x710   :  { %3223 = vmatmul.mubr.msk.f32.vlgmr.msra.gmra.mrb[6].mxu1 %vm346_vm3, %v1023_v55 }
 0x711   :  { %3231 = vmatpush3.xpose.msk.msra.mxu1 %vm193_vm2, %v1180_v56  ;;  %3232 = vmatprep.mubr.msk.f32.mxu1 %vm3549_vm1, %v3548_v7 }
 0x712   :  { %3240 = vmatprep.subr.mxu1 %v3548_v7 }
 0x737   :  { %v1020_v57 = vpop.xlane.xlu0 %1019 }
 0x738   :  { %3482 = vrcp.f32 %v1020_v57 }
 0x73b   :  { %v1178_v58 = vpop.permute.xlu0 %1177 }
 0x73c   :  { %3233 = vmatmul.mubr.msk.f32.vlgmr.msra.gmra.mrb[8].mxu1 %vm193_vm2, %v1178_v58 }
 0x73d   :  { %3242 = vmatprep.mubr.msk.f32.mxu1 %vm3549_vm1, %v3548_v7 }
 0x742   :  { %v3483_v59 = vpop.eup %3482 }
 0x743   :  { %v1024_v61 = vmul.f32 %v3483_v59, %v3479_v50 }
 0x745   :  { %3228 = vmatmul.mubr.msk.f32.vlgmr.msra.gmra.mrb[20].mxu0 %vm346_vm3, %v1024_v61 }
 0x746   :  { %3236 = vmatpush3.xpose.msk.msra.mxu0 %vm193_vm2, %v1258_v60  ;;  %3237 = vmatprep.mubr.msk.f32.mxu0 %vm3549_vm1, %v3548_v7 }
 0x747   :  { %3245 = vmatprep.subr.mxu0 %v3548_v7 }
 0x749   :  { %3238 = vmatmul.mubr.msk.f32.vlgmr.msra.gmra.mrb[22].mxu0 %vm193_vm2, %v1256_v62 }
 0x74a   :  { %3247 = vmatprep.mubr.msk.f32.mxu0 %vm3549_vm1, %v3548_v7 }
 0x7e3   :  { %v3775_v0 = vpop.f32.mrb[6].mxu1 }
 0x7e4   :  { %v3224_v2 = vpop.f32.mrb[7].mxu1 }
 0x80f   :  { %v1251_v3 = vpop.f32.mrb[8].mxu1 }
 0x810   :  { %v3234_v4 = vpop.f32.mrb[9].mxu1  ;;  %v1333_v5 = vsel %vm346_vm3, %v1251_v3, -inf }
 0x811   :  { %1334 = vmax.xlane.f32.xlu0 %v1333_v5 }
 0x818   :  { %v3778_v6 = vpop.f32.mrb[20].mxu0 }
 0x819   :  { %v3430_v8 = vpack.i.bf16 %v3778_v6, %v3775_v0  ;;  %v3229_v9 = vpop.f32.mrb[21].mxu0 }
 0x81c   :  { %v1329_v10 = vpop.f32.mrb[22].mxu0 }
 0x81d   :  { %v3239_v11 = vpop.f32.mrb[23].mxu0  ;;  %v1336_v12 = vsel %vm346_vm3, %v1329_v10, -inf }
 0x81e   :  { %1337 = vmax.xlane.f32.xlu1 %v1336_v12 }
 0x82f   :  { %1431 = vrot.lane.b32.xlu1 %v3659_v27, %s3552_s17 }
 0x833   :  { %1509 = vrot.lane.b32.xlu1 %v3639_v22, %s3553_s18 }
 0x837   :  { %1587 = vrot.lane.b32.xlu1 %v3648_v26, %s3553_s18 }
 0x83b   :  { %1585 = vrot.lane.b32.xlu1 %v3646_v25, %s3553_s18 }
 0x89e   :  { %v1335_v13 = vpop.xlane.xlu0 %1334 }
 0x89f   :  { %v1339_v14 = vsub.f32 %v1251_v3, %v1335_v13 }
 0x8a1   :  { %v1341_v15 = vmul.f32 1.442695, %v1339_v14 }
 0x8a3   :  { %3484 = vpow2.f32 %v1341_v15 }
 0x8ab   :  { %v1338_v16 = vpop.xlane.xlu1 %1337 }
 0x8ac   :  { %v1340_v20 = vsub.f32 %v1329_v10, %v1338_v16 }
 0x8ad   :  { %v3485_v17 = vpop.eup %3484 }
 0x8ae   :  { %v1345_v18 = vsel %vm346_vm3, %v3485_v17, 0.0  ;;  %v1343_v21 = vmul.f32 1.442695, %v1340_v20 }
 0x8af   :  { %1346 = vadd.xlane.f32.xlu0 %v1345_v18  ;;  %v1432_v19 = vpop.permute.xlu1 %1431 }
 0x8b0   :  { %3246 = vmatpush3.msra.mxu0 %v1432_v19  ;;  %3486 = vpow2.f32 %v1343_v21 }
 0x8b1   :  { %3255 = vmatprep.subr.mxu0 %v3548_v7 }
 0x8b3   :  { %v1510_v37 = vpop.permute.xlu1 %1509 }
 0x8b7   :  { %v1588_v41 = vpop.permute.xlu1 %1587 }
 0x8ba   :  { %v3487_v24 = vpop.eup %3486 }
 0x8bb   :  { %v1348_v29 = vsel %vm346_vm3, %v3487_v24, 0.0  ;;  %v1586_v43 = vpop.permute.xlu1 %1585 }
 0x8c5   :  { %1355 = vrot.lane.b32.xlu0 %v3663_v28, %s3552_s17 }
 0x8e4   :  { %1349 = vadd.xlane.f32.xlu0 %v1348_v29 }
 0x8fa   :  { %1507 = vrot.lane.b32.xlu0 %v3643_v23, %s3553_s18 }
 0x93c   :  { %v1347_v31 = vpop.xlane.xlu0 %1346 }
 0x93d   :  { %3488 = vrcp.f32 %v1347_v31 }
 0x940   :  { %v1356_v32 = vpop.permute.xlu0 %1355 }
 0x941   :  { %3241 = vmatpush3.msra.mxu1 %v1356_v32 }
 0x942   :  { %3250 = vmatprep.subr.mxu1 %v3548_v7 }
 0x947   :  { %v3489_v33 = vpop.eup %3488 }
 0x948   :  { %v1353_v34 = vmul.f32 %v3489_v33, %v3485_v17 }
 0x94a   :  { %3243 = vmatmul.mubr.msk.f32.vlgmr.msra.gmra.mrb[10].mxu1 %vm346_vm3, %v1353_v34 }
 0x94b   :  { %3251 = vmatpush3.xpose.msk.msra.mxu1 %vm193_vm2, %v1510_v37  ;;  %3252 = vmatprep.mubr.msk.f32.mxu1 %vm3549_vm1, %v3548_v7 }
 0x94c   :  { %3260 = vmatprep.subr.mxu1 %v3548_v7 }
 0x971   :  { %v1350_v38 = vpop.xlane.xlu0 %1349 }
 0x972   :  { %3490 = vrcp.f32 %v1350_v38 }
 0x975   :  { %v1508_v39 = vpop.permute.xlu0 %1507 }
 0x976   :  { %3253 = vmatmul.mubr.msk.f32.vlgmr.msra.gmra.mrb[12].mxu1 %vm193_vm2, %v1508_v39 }
 0x977   :  { %3262 = vmatprep.mubr.msk.f32.mxu1 %vm3549_vm1, %v3548_v7 }
 0x97c   :  { %v3491_v40 = vpop.eup %3490 }
 0x97d   :  { %v1354_v42 = vmul.f32 %v3491_v40, %v3487_v24 }
 0x97f   :  { %3248 = vmatmul.mubr.msk.f32.vlgmr.msra.gmra.mrb[24].mxu0 %vm346_vm3, %v1354_v42 }
 0x980   :  { %3256 = vmatpush3.xpose.msk.msra.mxu0 %vm193_vm2, %v1588_v41  ;;  %3257 = vmatprep.mubr.msk.f32.mxu0 %vm3549_vm1, %v3548_v7 }
 0x981   :  { %3265 = vmatprep.subr.mxu0 %v3548_v7 }
 0x983   :  { %3258 = vmatmul.mubr.msk.f32.vlgmr.msra.gmra.mrb[26].mxu0 %vm193_vm2, %v1586_v43 }
 0x984   :  { %3267 = vmatprep.mubr.msk.f32.mxu0 %vm3549_vm1, %v3548_v7 }
 0xa1d   :  { %v3815_v44 = vpop.f32.mrb[10].mxu1 }
 0xa1e   :  { %v3244_v45 = vpop.f32.mrb[11].mxu1 }
 0xa49   :  { %v1581_v46 = vpop.f32.mrb[12].mxu1 }
 0xa4a   :  { %v3254_v47 = vpop.f32.mrb[13].mxu1  ;;  %v1663_v48 = vsel %vm346_vm3, %v1581_v46, -inf }
 0xa4b   :  { %1664 = vmax.xlane.f32.xlu0 %v1663_v48 }
 0xa52   :  { %v3818_v49 = vpop.f32.mrb[24].mxu0 }
 0xa53   :  { %v3435_v50 = vpack.i.bf16 %v3818_v49, %v3815_v44  ;;  %v3249_v51 = vpop.f32.mrb[25].mxu0  ;;  %v2902_v44 = vld [vmem:[%s4040_s2] sm:$0xff]  ;;  %v2903_v49 = vld [vmem:[%s4040_s2 + $0x8] sm:$0xff] }
 0xa56   :  { %v1659_v52 = vpop.f32.mrb[26].mxu0 }
 0xa57   :  { %v3259_v53 = vpop.f32.mrb[27].mxu0  ;;  %v1666_v54 = vsel %vm346_vm3, %v1659_v52, -inf }
 0xa58   :  { %1667 = vmax.xlane.f32.xlu1 %v1666_v54 }
 0xa69   :  { %1761 = vrot.lane.b32.xlu1 %v3659_v27, %s3553_s18 }
 0xa6d   :  { %1839 = vrot.lane.b32.xlu1 %v3639_v22, %s3554_s19 }
 0xa71   :  { %1917 = vrot.lane.b32.xlu1 %v3648_v26, %s3554_s19 }
 0xa75   :  { %1915 = vrot.lane.b32.xlu1 %v3646_v25, %s3554_s19 }
 0xad8   :  { %v1665_v55 = vpop.xlane.xlu0 %1664 }
 0xad9   :  { %v1669_v56 = vsub.f32 %v1581_v46, %v1665_v55 }
 0xadb   :  { %v1671_v57 = vmul.f32 1.442695, %v1669_v56 }
 0xadd   :  { %3492 = vpow2.f32 %v1671_v57 }
 0xae5   :  { %v1668_v58 = vpop.xlane.xlu1 %1667 }
 0xae6   :  { %v1670_v62 = vsub.f32 %v1659_v52, %v1668_v58 }
 0xae7   :  { %v3493_v59 = vpop.eup %3492 }
 0xae8   :  { %v1675_v60 = vsel %vm346_vm3, %v3493_v59, 0.0  ;;  %v1673_v2 = vmul.f32 1.442695, %v1670_v62 }
 0xae9   :  { %1676 = vadd.xlane.f32.xlu0 %v1675_v60  ;;  %v1762_v61 = vpop.permute.xlu1 %1761 }
 0xaea   :  { %3266 = vmatpush3.msra.mxu0 %v1762_v61  ;;  %3494 = vpow2.f32 %v1673_v2 }
 0xaeb   :  { %3275 = vmatprep.subr.mxu0 %v3548_v7 }
 0xaed   :  { %v1840_v12 = vpop.permute.xlu1 %1839 }
 0xaf1   :  { %v1918_v16 = vpop.permute.xlu1 %1917 }
 0xaf4   :  { %v3495_v3 = vpop.eup %3494 }
 0xaf5   :  { %v1678_v4 = vsel %vm346_vm3, %v3495_v3, 0.0  ;;  %v1916_v18 = vpop.permute.xlu1 %1915 }
 0xaff   :  { %1685 = vrot.lane.b32.xlu0 %v3663_v28, %s3553_s18 }
 0xb1e   :  { %1679 = vadd.xlane.f32.xlu0 %v1678_v4 }
 0xb34   :  { %1837 = vrot.lane.b32.xlu0 %v3643_v23, %s3554_s19 }
 0xb76   :  { %v1677_v5 = vpop.xlane.xlu0 %1676 }
 0xb77   :  { %3496 = vrcp.f32 %v1677_v5 }
 0xb7a   :  { %v1686_v9 = vpop.permute.xlu0 %1685 }
 0xb7b   :  { %3261 = vmatpush3.msra.mxu1 %v1686_v9 }
 0xb7c   :  { %3270 = vmatprep.subr.mxu1 %v3548_v7 }
 0xb81   :  { %v3497_v10 = vpop.eup %3496 }
 0xb82   :  { %v1683_v11 = vmul.f32 %v3497_v10, %v3493_v59 }
 0xb84   :  { %3263 = vmatmul.mubr.msk.f32.vlgmr.msra.gmra.mrb[14].mxu1 %vm346_vm3, %v1683_v11 }
 0xb85   :  { %3271 = vmatpush3.xpose.msk.msra.mxu1 %vm193_vm2, %v1840_v12  ;;  %3272 = vmatprep.mubr.msk.f32.mxu1 %vm3549_vm1, %v3548_v7 }
 0xb86   :  { %3280 = vmatprep.subr.mxu1 %v3548_v7 }
 0xbab   :  { %v1680_v13 = vpop.xlane.xlu0 %1679 }
 0xbac   :  { %3498 = vrcp.f32 %v1680_v13 }
 0xbaf   :  { %v1838_v14 = vpop.permute.xlu0 %1837 }
 0xbb0   :  { %3273 = vmatmul.mubr.msk.f32.vlgmr.msra.gmra.mrb[16].mxu1 %vm193_vm2, %v1838_v14 }
 0xbb1   :  { %3282 = vmatprep.mubr.msk.f32.mxu1 %vm3549_vm1, %v3548_v7 }
 0xbb6   :  { %v3499_v15 = vpop.eup %3498 }
 0xbb7   :  { %v1684_v17 = vmul.f32 %v3499_v15, %v3495_v3 }
 0xbb9   :  { %3268 = vmatmul.mubr.msk.f32.vlgmr.msra.gmra.mrb[28].mxu0 %vm346_vm3, %v1684_v17 }
 0xbba   :  { %3276 = vmatpush3.xpose.msk.msra.mxu0 %vm193_vm2, %v1918_v16  ;;  %3277 = vmatprep.mubr.msk.f32.mxu0 %vm3549_vm1, %v3548_v7 }
 0xbbb   :  { %3285 = vmatprep.subr.mxu0 %v3548_v7 }
 0xbbd   :  { %3278 = vmatmul.mubr.msk.f32.vlgmr.msra.gmra.mrb[30].mxu0 %vm193_vm2, %v1916_v18 }
 0xbbe   :  { %3287 = vmatprep.mubr.msk.f32.mxu0 %vm3549_vm1, %v3548_v7 }
 0xc57   :  { %v3855_v19 = vpop.f32.mrb[14].mxu1 }
 0xc58   :  { %v3264_v20 = vpop.f32.mrb[15].mxu1 }
 0xc83   :  { %v1911_v21 = vpop.f32.mrb[16].mxu1 }
 0xc84   :  { %v3274_v24 = vpop.f32.mrb[17].mxu1  ;;  %v1993_v29 = vsel %vm346_vm3, %v1911_v21, -inf }
 0xc85   :  { %1994 = vmax.xlane.f32.xlu0 %v1993_v29 }
 0xc8c   :  { %v3858_v31 = vpop.f32.mrb[28].mxu0 }
 0xc8d   :  { %v3440_v32 = vpack.i.bf16 %v3858_v31, %v3855_v19  ;;  %v3269_v33 = vpop.f32.mrb[29].mxu0 }
 0xc90   :  { %v1989_v34 = vpop.f32.mrb[30].mxu0 }
 0xc91   :  { %v3279_v37 = vpop.f32.mrb[31].mxu0  ;;  %v1996_v38 = vsel %vm346_vm3, %v1989_v34, -inf }
 0xc92   :  { %1997 = vmax.xlane.f32.xlu1 %v1996_v38 }
 0xca3   :  { %2091 = vrot.lane.b32.xlu1 %v3659_v27, %s3554_s19 }
 0xca7   :  { %2169 = vrot.lane.b32.xlu1 %v3639_v22, %s3555_s20 }
 0xcab   :  { %2247 = vrot.lane.b32.xlu1 %v3648_v26, %s3555_s20 }
 0xcaf   :  { %2245 = vrot.lane.b32.xlu1 %v3646_v25, %s3555_s20 }
 0xd12   :  { %v1995_v39 = vpop.xlane.xlu0 %1994 }
 0xd13   :  { %v1999_v40 = vsub.f32 %v1911_v21, %v1995_v39 }
 0xd15   :  { %v2001_v41 = vmul.f32 1.442695, %v1999_v40 }
 0xd17   :  { %3500 = vpow2.f32 %v2001_v41 }
 0xd1f   :  { %v1998_v42 = vpop.xlane.xlu1 %1997 }
 0xd20   :  { %v2000_v47 = vsub.f32 %v1989_v34, %v1998_v42 }
 0xd21   :  { %v3501_v43 = vpop.eup %3500 }
 0xd22   :  { %v2005_v45 = vsel %vm346_vm3, %v3501_v43, 0.0  ;;  %v2003_v48 = vmul.f32 1.442695, %v2000_v47 }
 0xd23   :  { %2006 = vadd.xlane.f32.xlu0 %v2005_v45  ;;  %v2092_v46 = vpop.permute.xlu1 %2091 }
 0xd24   :  { %3286 = vmatpush3.msra.mxu0 %v2092_v46  ;;  %3502 = vpow2.f32 %v2003_v48 }
 0xd25   :  { %3295 = vmatprep.subr.mxu0 %v3548_v7 }
 0xd27   :  { %v2170_v57 = vpop.permute.xlu1 %2169 }
 0xd2b   :  { %v2248_v61 = vpop.permute.xlu1 %2247 }
 0xd2e   :  { %v3503_v51 = vpop.eup %3502 }
 0xd2f   :  { %v2008_v52 = vsel %vm346_vm3, %v3503_v51, 0.0  ;;  %v2246_v2 = vpop.permute.xlu1 %2245 }
 0xd39   :  { %2015 = vrot.lane.b32.xlu0 %v3663_v28, %s3554_s19 }
 0xd58   :  { %2009 = vadd.xlane.f32.xlu0 %v2008_v52 }
 0xd6e   :  { %2167 = vrot.lane.b32.xlu0 %v3643_v23, %s3555_s20 }
 0xdb0   :  { %v2007_v53 = vpop.xlane.xlu0 %2006 }
 0xdb1   :  { %3504 = vrcp.f32 %v2007_v53 }
 0xdb4   :  { %v2016_v54 = vpop.permute.xlu0 %2015 }
 0xdb5   :  { %3281 = vmatpush3.msra.mxu1 %v2016_v54 }
 0xdb6   :  { %3290 = vmatprep.subr.mxu1 %v3548_v7 }
 0xdbb   :  { %v3505_v55 = vpop.eup %3504 }
 0xdbc   :  { %v2013_v56 = vmul.f32 %v3505_v55, %v3501_v43 }
 0xdbe   :  { %3283 = vmatmul.mubr.msk.f32.vlgmr.msra.gmra.mrb[18].mxu1 %vm346_vm3, %v2013_v56 }
 0xdbf   :  { %3291 = vmatpush3.xpose.msk.msra.mxu1 %vm193_vm2, %v2170_v57  ;;  %3292 = vmatprep.mubr.msk.f32.mxu1 %vm3549_vm1, %v3548_v7 }
 0xdc0   :  { %3300 = vmatprep.subr.mxu1 %v3548_v7 }
 0xde5   :  { %v2010_v58 = vpop.xlane.xlu0 %2009 }
 0xde6   :  { %3506 = vrcp.f32 %v2010_v58 }
 0xde9   :  { %v2168_v59 = vpop.permute.xlu0 %2167 }
 0xdea   :  { %3293 = vmatmul.mubr.msk.f32.vlgmr.msra.gmra.mrb[20].mxu1 %vm193_vm2, %v2168_v59 }
 0xdeb   :  { %3302 = vmatprep.mubr.msk.f32.mxu1 %vm3549_vm1, %v3548_v7 }
 0xdf0   :  { %v3507_v60 = vpop.eup %3506 }
 0xdf1   :  { %v2014_v62 = vmul.f32 %v3507_v60, %v3503_v51 }
 0xdf3   :  { %3288 = vmatmul.mubr.msk.f32.vlgmr.msra.gmra.mrb[32].mxu0 %vm346_vm3, %v2014_v62 }
 0xdf4   :  { %3296 = vmatpush3.xpose.msk.msra.mxu0 %vm193_vm2, %v2248_v61  ;;  %3297 = vmatprep.mubr.msk.f32.mxu0 %vm3549_vm1, %v3548_v7 }
 0xdf5   :  { %3305 = vmatprep.subr.mxu0 %v3548_v7 }
 0xdf7   :  { %3298 = vmatmul.mubr.msk.f32.vlgmr.msra.gmra.mrb[34].mxu0 %vm193_vm2, %v2246_v2 }
 0xdf8   :  { %3307 = vmatprep.mubr.msk.f32.mxu0 %vm3549_vm1, %v3548_v7 }
 0xe91   :  { %v3895_v3 = vpop.f32.mrb[18].mxu1 }
 0xe92   :  { %v3284_v4 = vpop.f32.mrb[19].mxu1 }
 0xebd   :  { %v2241_v5 = vpop.f32.mrb[20].mxu1 }
 0xebe   :  { %v3294_v9 = vpop.f32.mrb[21].mxu1  ;;  %v2323_v10 = vsel %vm346_vm3, %v2241_v5, -inf }
 0xebf   :  { %2324 = vmax.xlane.f32.xlu0 %v2323_v10  ;;  %v2905_v10 = vld [vmem:[%s4040_s2 + $0x18] sm:$0xff] }
 0xec6   :  { %v3898_v11 = vpop.f32.mrb[32].mxu0 }
 0xec7   :  { %v3445_v12 = vpack.i.bf16 %v3898_v11, %v3895_v3  ;;  %v3289_v13 = vpop.f32.mrb[33].mxu0  ;;  %v3381_v3 = vpack.c.bf16 %v2903_v49, %v2902_v44  ;;  %v3070_v44 = vld [vmem:[%s4041_s3] ss:$0 sm:$0xff] }
 0xec8   :  { %v2907_v13 = vld [vmem:[%s4040_s2 + $0x28] sm:$0xff] }
 0xeca   :  { %v2319_v14 = vpop.f32.mrb[34].mxu0 }
 0xecb   :  { %v3299_v15 = vpop.f32.mrb[35].mxu0  ;;  %v2326_v16 = vsel %vm346_vm3, %v2319_v14, -inf }
 0xecc   :  { %2327 = vmax.xlane.f32.xlu1 %v2326_v16  ;;  %v2908_v15 = vld [vmem:[%s4040_s2 + $0x30] sm:$0xff]  ;;  %v2909_v16 = vld [vmem:[%s4040_s2 + $0x38] sm:$0xff] }
 0xedd   :  { %2421 = vrot.lane.b32.xlu1 %v3659_v27, %s3555_s20 }
 0xee1   :  { %2499 = vrot.lane.b32.xlu1 %v3639_v22, %s3556_s21 }
 0xee5   :  { %2577 = vrot.lane.b32.xlu1 %v3648_v26, %s3556_s21 }
 0xee9   :  { %2575 = vrot.lane.b32.xlu1 %v3646_v25, %s3556_s21 }
 0xf4c   :  { %v2325_v17 = vpop.xlane.xlu0 %2324 }
 0xf4d   :  { %v2329_v18 = vsub.f32 %v2241_v5, %v2325_v17  ;;  %v3393_v17 = vpack.c.bf16 %v2909_v16, %v2908_v15 }
 0xf4f   :  { %v2331_v20 = vmul.f32 1.442695, %v2329_v18  ;;  %v2910_v18 = vld [vmem:[%s4040_s2 + $0x40] sm:$0xff] }
 0xf51   :  { %3508 = vpow2.f32 %v2331_v20  ;;  %v2911_v20 = vld [vmem:[%s4040_s2 + $0x48] sm:$0xff] }
 0xf59   :  { %v2328_v21 = vpop.xlane.xlu1 %2327 }
 0xf5a   :  { %v2330_v22 = vsub.f32 %v2319_v14, %v2328_v21  ;;  %v3397_v21 = vpack.c.bf16 %v2911_v20, %v2910_v18 }
 0xf5b   :  { %v3509_v24 = vpop.eup %3508 }
 0xf5c   :  { %v2335_v29 = vsel %vm346_vm3, %v3509_v24, 0.0  ;;  %v2333_v26 = vmul.f32 1.442695, %v2330_v22  ;;  %v2914_v22 = vld [vmem:[%s4040_s2 + $0x60] sm:$0xff] }
 0xf5d   :  { %2336 = vadd.xlane.f32.xlu0 %v2335_v29  ;;  %v2422_v33 = vpop.permute.xlu1 %2421  ;;  %v2913_v29 = vld [vmem:[%s4040_s2 + $0x58] sm:$0xff] }
 0xf5e   :  { %3306 = vmatpush3.msra.mxu0 %v2422_v33  ;;  %3510 = vpow2.f32 %v2333_v26  ;;  %v2915_v26 = vld [vmem:[%s4040_s2 + $0x68] sm:$0xff] }
 0xf5f   :  { %3315 = vmatprep.subr.mxu0 %v3548_v7 }
 0xf61   :  { %v2500_v41 = vpop.permute.xlu1 %2499 }
 0xf65   :  { %v2578_v45 = vpop.permute.xlu1 %2577 }
 0xf68   :  { %v3511_v25 = vpop.eup %3510 }
 0xf69   :  { %v2338_v34 = vsel %vm346_vm3, %v3511_v25, 0.0  ;;  %v2576_v47 = vpop.permute.xlu1 %2575 }
 0xf73   :  { %2345 = vrot.lane.b32.xlu0 %v3663_v28, %s3555_s20 }
 0xf92   :  { %2339 = vadd.xlane.f32.xlu0 %v2338_v34  ;;  %v2916_v34 = vld [vmem:[%s4040_s2 + $0x70] sm:$0xff] }
 0xfa8   :  { %2497 = vrot.lane.b32.xlu0 %v3643_v23, %s3556_s21 }
 0xfea   :  { %v2337_v37 = vpop.xlane.xlu0 %2336 }
 0xfeb   :  { %3512 = vrcp.f32 %v2337_v37  ;;  %v2917_v37 = vld [vmem:[%s4040_s2 + $0x78] sm:$0xff] }
 0xfee   :  { %v2346_v38 = vpop.permute.xlu0 %2345 }
 0xfef   :  { %3301 = vmatpush3.msra.mxu1 %v2346_v38  ;;  %v3409_v38 = vpack.c.bf16 %v2917_v37, %v2916_v34 }
 0xff0   :  { %3310 = vmatprep.subr.mxu1 %v3548_v7 }
 0xff5   :  { %v3513_v39 = vpop.eup %3512 }
 0xff6   :  { %v2343_v40 = vmul.f32 %v3513_v39, %v3509_v24  ;;  %v2912_v24 = vld [vmem:[%s4040_s2 + $0x50] sm:$0xff] }
 0xff7   :  { %v3401_v33 = vpack.c.bf16 %v2913_v29, %v2912_v24 }
 0xff8   :  { %3303 = vmatmul.mubr.msk.f32.vlgmr.msra.gmra.mrb[22].mxu1 %vm346_vm3, %v2343_v40 }
 0xff9   :  { %3311 = vmatpush3.xpose.msk.msra.mxu1 %vm193_vm2, %v2500_v41  ;;  %3312 = vmatprep.mubr.msk.f32.mxu1 %vm3549_vm1, %v3548_v7 }
 0xffa   :  { %3320 = vmatprep.subr.mxu1 %v3548_v7 }
0x101f   :  { %v2340_v42 = vpop.xlane.xlu0 %2339 }
0x1020   :  { %3514 = vrcp.f32 %v2340_v42 }
0x1023   :  { %v2498_v23 = vpop.permute.xlu0 %2497 }
0x1024   :  { %3313 = vmatmul.mubr.msk.f32.vlgmr.msra.gmra.mrb[24].mxu1 %vm193_vm2, %v2498_v23 }
0x1025   :  { %3322 = vmatprep.mubr.msk.f32.mxu1 %vm3549_vm1, %v3548_v7 }
0x102a   :  { %v3515_v43 = vpop.eup %3514 }
0x102b   :  { %v2344_v46 = vmul.f32 %v3515_v43, %v3511_v25  ;;  %v3405_v25 = vpack.c.bf16 %v2915_v26, %v2914_v22 }
0x102d   :  { %3308 = vmatmul.mubr.msk.f32.vlgmr.msra.gmra.mrb[36].mxu0 %vm346_vm3, %v2344_v46 }
0x102e   :  { %3316 = vmatpush3.xpose.msk.msra.mxu0 %vm193_vm2, %v2578_v45  ;;  %3317 = vmatprep.mubr.msk.f32.mxu0 %vm3549_vm1, %v3548_v7 }
0x102f   :  { %3325 = vmatprep.subr.mxu0 %v3548_v7 }
0x1031   :  { %3318 = vmatmul.mubr.msk.f32.vlgmr.msra.gmra.mrb[38].mxu0 %vm193_vm2, %v2576_v47 }
0x1032   :  { %3327 = vmatprep.mubr.msk.f32.mxu0 %vm3549_vm1, %v3548_v7 }
0x10cb   :  { %v2417_v48 = vpop.f32.mrb[22].mxu1 }
0x10cc   :  { %v3304_v51 = vpop.f32.mrb[23].mxu1 }
0x10f7   :  { %v2571_v52 = vpop.f32.mrb[24].mxu1 }
0x10f8   :  { %v3314_v53 = vpop.f32.mrb[25].mxu1  ;;  %v2653_v54 = vsel %vm346_vm3, %v2571_v52, -inf }
0x10f9   :  { %2654 = vmax.xlane.f32.xlu0 %v2653_v54 }
0x1100   :  { %v2493_v55 = vpop.f32.mrb[36].mxu0 }
0x1101   :  { %v3450_v56 = vpack.i.bf16 %v2493_v55, %v2417_v48  ;;  %v3309_v57 = vpop.f32.mrb[37].mxu0 }
0x1104   :  { %v2649_v58 = vpop.f32.mrb[38].mxu0 }
0x1105   :  { %v3319_v59 = vpop.f32.mrb[39].mxu0  ;;  %v2656_v60 = vsel %vm346_vm3, %v2649_v58, -inf }
0x1106   :  { %2657 = vmax.xlane.f32.xlu1 %v2656_v60 }
0x1117   :  { %2751 = vrot.lane.b32.xlu1 %v3659_v27, %s3556_s21 }
0x111b   :  { %3426 = vrot.lane.b32.xlu1 %v3425_v36, %s3556_s21 }
0x111f   :  { %3431 = vrot.lane.b32.xlu1 %v3430_v8, %s3555_s20 }
0x1123   :  { %3441 = vrot.lane.b32.xlu1 %v3440_v32, %s3553_s18 }
0x1127   :  { %3451 = vrot.lane.b32.xlu1 %v3450_v56, %s3551_s1 }
0x1186   :  { %v2655_v7 = vpop.xlane.xlu0 %2654 }
0x1187   :  { %v2659_v61 = vsub.f32 %v2571_v52, %v2655_v7 }
0x1189   :  { %v2661_v27 = vmul.f32 1.442695, %v2659_v61 }
0x118b   :  { %3516 = vpow2.f32 %v2661_v27 }
0x1193   :  { %v2658_v62 = vpop.xlane.xlu1 %2657 }
0x1194   :  { %v2660_v2 = vsub.f32 %v2649_v58, %v2658_v62 }
0x1195   :  { %v3517_v30 = vpop.eup %3516 }
0x1196   :  { %v2663_v35 = vmul.f32 1.442695, %v2660_v2  ;;  %v2665_v36 = vsel %vm346_vm3, %v3517_v30, 0.0 }
0x1197   :  { %2666 = vadd.xlane.f32.xlu0 %v2665_v36  ;;  %v2752_v0 = vpop.permute.xlu1 %2751 }
0x1198   :  { %3518 = vpow2.f32 %v2663_v35  ;;  %3326 = vmatpush3.msra.mxu0 %v2752_v0 }
0x119b   :  { %v3427_v43 = vpop.permute.xlu1 %3426 }
0x119c   :  { %v3429_v47 = vunpack.i.h.bf16 %v3427_v43  ;;  %v3428_v48 = vunpack.i.l.bf16 %v3427_v43 }
0x119e   :  { %v2884_v57 = vsel %vm193_vm2, %v3701_v1, %v3429_v47  ;;  %v2883_v58 = vsel %vm193_vm2, %v3699_v63, %v3428_v48 }
0x119f   :  { %v3432_v45 = vpop.permute.xlu1 %3431 }
0x11a0   :  { %v3434_v51 = vunpack.i.h.bf16 %v3432_v45  ;;  %v3433_v52 = vunpack.i.l.bf16 %v3432_v45 }
0x11a2   :  { %v3519_v6 = vpop.eup %3518  ;;  %v2885_v59 = vsel %vm32_vm0, %v2883_v58, %v3433_v52  ;;  %v2886_v60 = vsel %vm32_vm0, %v2884_v57, %v3434_v51 }
0x11a3   :  { %v2668_v8 = vsel %vm346_vm3, %v3519_v6, 0.0  ;;  %v3442_v53 = vpop.permute.xlu1 %3441 }
0x11a4   :  { %2669 = vadd.xlane.f32.xlu0 %v2668_v8  ;;  %v3444_v2 = vunpack.i.h.bf16 %v3442_v53 }
0x11a7   :  { %v3452_v35 = vpop.permute.xlu1 %3451 }
0x11a8   :  { %v3454_v8 = vunpack.i.h.bf16 %v3452_v35  ;;  %v3453_v63 = vunpack.i.l.bf16 %v3452_v35 }
0x11ba   :  { %2675 = vrot.lane.b32.xlu0 %v3663_v28, %s3556_s21 }
0x11be   :  { %3436 = vrot.lane.b32.xlu0 %v3435_v50, %s3554_s19  ;;  %v2904_v50 = vld [vmem:[%s4040_s2 + $0x10] sm:$0xff] }
0x11bf   :  { %v3385_v11 = vpack.c.bf16 %v2905_v10, %v2904_v50 }
0x11c2   :  { %3446 = vrot.lane.b32.xlu0 %v3445_v12, %s3552_s17  ;;  %v2906_v12 = vld [vmem:[%s4040_s2 + $0x20] sm:$0xff] }
0x11c3   :  { %v3389_v14 = vpack.c.bf16 %v2907_v13, %v2906_v12 }
0x1224   :  { %v2667_v19 = vpop.xlane.xlu0 %2666 }
0x1225   :  { %3520 = vrcp.f32 %v2667_v19 }
0x122f   :  { %v3521_v32 = vpop.eup %3520 }
0x1230   :  { %v2673_v4 = vmul.f32 %v3521_v32, %v3517_v30  ;;  %v3443_v30 = vunpack.i.l.bf16 %v3442_v53 }
0x1231   :  { %v2670_v31 = vpop.xlane.xlu0 %2669 }
0x1232   :  { %3522 = vrcp.f32 %v2670_v31 }
0x1235   :  { %v2676_v5 = vpop.permute.xlu0 %2675 }
0x1236   :  { %3321 = vmatpush3.msra.mxu1 %v2676_v5 }
0x1237   :  { %3323 = vmatmul.mubr.msk.f32.vlgmr.msra.gmra.mrb[26].mxu1 %vm346_vm3, %v2673_v4  ;;  %3382 = vmatprep.subr.bf16.mxu1 %v3381_v3 }
0x1238   :  { %3384 = vmatpush3.bf16.msra.mxu1 %v3381_v3 }
0x1239   :  { %3386 = vmatprep.subr.bf16.mxu1 %v3385_v11  ;;  %v3437_v46 = vpop.permute.xlu0 %3436 }
0x123a   :  { %v3439_v54 = vunpack.i.h.bf16 %v3437_v46  ;;  %v3438_v55 = vunpack.i.l.bf16 %v3437_v46 }
0x123c   :  { %v3523_v28 = vpop.eup %3522  ;;  %3388 = vmatpush3.bf16.msra.mxu1 %v3385_v11  ;;  %v2888_v7 = vsel %vm2887_vm4, %v2885_v59, %v3438_v55  ;;  %v2889_v61 = vsel %vm2887_vm4, %v2886_v60, %v3439_v54 }
0x123d   :  { %v2674_v9 = vmul.f32 %v3523_v28, %v3519_v6  ;;  %3390 = vmatprep.subr.bf16.mxu1 %v3389_v14  ;;  %v3447_v56 = vpop.permute.xlu0 %3446  ;;  %v2892_v36 = vsel %vm2890_vm5, %v2889_v61, %v3444_v2  ;;  %v2891_v0 = vsel %vm2890_vm5, %v2888_v7, %v3443_v30 }
0x123e   :  { %v3449_v27 = vunpack.i.h.bf16 %v3447_v56  ;;  %v3448_v62 = vunpack.i.l.bf16 %v3447_v56 }
0x123f   :  { %3328 = vmatmul.mubr.msk.f32.vlgmr.msra.gmra.mrb[40].mxu0 %vm346_vm3, %v2674_v9 }
0x1240   :  { %3392 = vmatpush3.bf16.msra.mxu1 %v3389_v14  ;;  %v2895_v6 = vsel %vm2893_vm6, %v2892_v36, %v3449_v27  ;;  %v2894_v1 = vsel %vm2893_vm6, %v2891_v0, %v3448_v62 }
0x1241   :  { %3394 = vmatprep.subr.bf16.mxu1 %v3393_v17  ;;  %v2897_v4 = vsel %vm2896_vm7, %v2894_v1, %v3453_v63  ;;  %v2898_v5 = vsel %vm2896_vm7, %v2895_v6, %v3454_v8 }
0x1244   :  { %3396 = vmatpush3.bf16.msra.mxu1 %v3393_v17 }
0x1245   :  { %3398 = vmatprep.subr.bf16.mxu1 %v3397_v21 }
0x1248   :  { %3400 = vmatpush3.bf16.msra.mxu1 %v3397_v21 }
0x1249   :  { %3402 = vmatprep.subr.bf16.mxu1 %v3401_v33 }
0x124c   :  { %3404 = vmatpush3.bf16.msra.mxu1 %v3401_v33 }
0x124d   :  { %3406 = vmatprep.subr.bf16.mxu1 %v3405_v25 }
0x1250   :  { %3408 = vmatpush3.bf16.msra.mxu1 %v3405_v25 }
0x1251   :  { %3410 = vmatprep.subr.bf16.mxu1 %v3409_v38 }
0x1254   :  { %3412 = vmatpush3.bf16.msra.mxu1 %v3409_v38 }
0x130a   :  { %v2747_v39 = vpop.f32.mrb[26].mxu1 }
0x130b   :  { %v3324_v40 = vpop.f32.mrb[27].mxu1 }
0x1312   :  { %v2823_v41 = vpop.f32.mrb[40].mxu0 }
0x1313   :  { %v3455_v42 = vpack.i.bf16 %v2823_v41, %v2747_v39  ;;  %v3329_v23 = vpop.f32.mrb[41].mxu0 }
0x1315   :  { %3456 = vrot.lane.b32.xlu0 %v3455_v42, %s3550_s0 }
0x1387   :  { %v3457_v19 = vpop.permute.xlu0 %3456 }
0x1388   :  { %v3459_v31 = vunpack.i.h.bf16 %v3457_v19  ;;  %v3458_v32 = vunpack.i.l.bf16 %v3457_v19 }
0x138a   :  { %v2900_v28 = vsel %vm2899_vm8, %v2897_v4, %v3458_v32  ;;  %v2901_v9 = vsel %vm2899_vm8, %v2898_v5, %v3459_v31 }
0x138b   :  { %3362 = vmatprep.mubr.f32.mxu1 %v2900_v28 }
0x138c   :  { %3363 = vmatmul.mubr.f32.vlgmr.msra.gmra.mrb[28].mxu1 %v2901_v9 }
0x145f   :  { %v3364_v49 = vpop.f32.mrb[28].mxu1 }
0x1460   :  { %v2997_v50 = vadd.f32 %v3364_v49, %v3070_v44  ;;  %v2991_v3 = vpop.f32.mrb[29].mxu1 }
0x1461   :  { %v2992_v10 = vadd.f32 %v3070_v44, %v2991_v3 }
0x1462   :  { %3001 = vst.msk [vmem:[#allocation2 + $0x8] sm:$0xff] %vm32_vm0, %v2997_v50 }
0x1463   :  { %3000 = vst.msk [vmem:[#allocation2] sm:$0xff] %vm32_vm0, %v2992_v10 }
0x1464   :  { %3535 = shalt.err (!%p3532_p4)
}
0x1465   :  { %s3536_s5 = scalar_lea.hbm %s4042_s4, 256 }
0x1466   :  { %p3537_p5 = scmp.ne.s32.totalorder %s4042_s4, %s3536_s5  ;;  %p3540_p6 = scmp.lt.u32.totalorder %s3536_s5, %s4042_s4 }
0x1468   :  { %p3542_p7 = pnand %p3540_p6, %p3537_p5 }
0x146a   :  { %3545 = shalt.err (!%p3542_p7)
}
0x146b   :  { %s3558_s10 = smov 128   ;;  %s3559_s11 = smov 8  }
0x146c   :  { %3013 = dma.vmem_to_hbm [thread:$0]  %s3008_s28, 256, %s4042_s4, [#allocation3], %s3558_s10, %s3558_s10, %s3559_s11  }
0x146d   :  { %3546 = dma.done.wait [#allocation3], 256  }
0x146e   :  { %3547 = vsyncadd [#allocation3], 4294967040 }
0x146f   :  { %3017 = vsyncpa [#allocation3], 1 }

</bundles_post_ra>
